<compile_context>
chip_gen: v7x
topology: tpu7x:2x2x1
jax: 0.10.0
libtpu: 0.0.40
codegen_flags: <defaults>
</compile_context>

<pallas_src>
import math

import jax
import jax.numpy as jnp
from jax.experimental import pallas as pl
from jax.experimental.pallas import tpu as pltpu


def _make_kernel(heads: int, head_dim: int):
    eps = 1e-5

    def kernel(q_ref, k_ref, v_ref, bias_ref,
               wq_ref, wk_ref, wv_ref, wo_ref, w1_ref, w2_ref,
               pvec_ref, bf1_ref, o_ref):
        H, D = heads, head_dim
        L, E = q_ref.shape

        # query kept fp32 for the residual; cast once for the MXU.
        q32 = q_ref[...]                                   # (L, E) f32
        qb = q32.astype(jnp.bfloat16)
        kb = k_ref[...]                                     # (L, E) bf16 (cast host-side)
        vb = v_ref[...]                                     # (L, E) bf16

        # ---- lane-dense block-diagonal QKV projections: (L,128)@(128,128) each ----
        # wq is pre-scaled by 1/sqrt(E) host-side.
        qp = jnp.dot(qb, wq_ref[...], preferred_element_type=jnp.float32)   # (L, E)
        kp = jnp.dot(kb, wk_ref[...], preferred_element_type=jnp.float32)
        vp = jnp.dot(vb, wv_ref[...], preferred_element_type=jnp.float32)

        bias = bias_ref[...]                                # (L, L) additive mask, f32

        # ---- per-head attention; concat-of-heads fused into the output projection ----
        attn_out = jnp.zeros((L, E), jnp.float32)
        for h in range(H):
            sl = slice(h * D, (h + 1) * D)
            qh = qp[:, sl].astype(jnp.bfloat16)             # (L, D)
            kh = kp[:, sl].astype(jnp.bfloat16)
            vh = vp[:, sl].astype(jnp.bfloat16)

            # q.kT contraction on the last dim of both operands (no transpose).
            e_h = jnp.einsum('qd,kd->qk', qh, kh,
                             preferred_element_type=jnp.float32)            # (L, L)
            e_h = e_h + bias
            m = jnp.max(e_h, axis=-1, keepdims=True)
            p = jnp.exp(e_h - m)
            inv = pl.reciprocal(jnp.sum(p, axis=-1, keepdims=True), approx=True)
            a_h = (p * inv).astype(jnp.bfloat16)                            # (L, L)

            ctx_h = jnp.dot(a_h, vh, preferred_element_type=jnp.float32)    # (L, D)
            # fused "concat + fc_out": accumulate ctx_h @ Wo^T[hD:(h+1)D, :]
            attn_out = attn_out + jnp.dot(ctx_h.astype(jnp.bfloat16),
                                          wo_ref[sl, :],
                                          preferred_element_type=jnp.float32)  # (L, E)

        attn_out = attn_out + pvec_ref[0:1, :]              # + bo

        def layernorm(x, g, b):
            mu = jnp.mean(x, axis=-1, keepdims=True)
            var = jnp.mean((x - mu) ** 2, axis=-1, keepdims=True)
            return (x - mu) * jax.lax.rsqrt(var + eps) * g + b

        # TODO(synk): dropout is modeled as identity (eval mode / p = 0.0).
        x = layernorm(attn_out + q32, pvec_ref[1:2, :], pvec_ref[2:3, :])

        # ---- feed-forward ----
        xb = x.astype(jnp.bfloat16)
        h1 = jnp.dot(xb, w1_ref[...], preferred_element_type=jnp.float32) + bf1_ref[...]
        h1 = jnp.maximum(h1, 0.0).astype(jnp.bfloat16)
        ff = jnp.dot(h1, w2_ref[...], preferred_element_type=jnp.float32) + pvec_ref[3:4, :]

        o_ref[...] = layernorm(ff + x, pvec_ref[4:5, :], pvec_ref[5:6, :]).astype(o_ref.dtype)

    return kernel


def transformer_block(value, key, query, mask, params, heads):
    N, L, E = query.shape
    D = E // heads
    H_ff = params["w1"].shape[0]
    scale = 1.0 / math.sqrt(E)

    # ---- host-side weight/layout plumbing (runs once per call, outside the kernel) ----
    eye_h = jnp.eye(heads, dtype=jnp.float32)
    wq_bd = jnp.kron(eye_h, params["wq"].T * scale).astype(jnp.bfloat16)   # (E, E), scaled
    wk_bd = jnp.kron(eye_h, params["wk"].T).astype(jnp.bfloat16)           # (E, E)
    wv_bd = jnp.kron(eye_h, params["wv"].T).astype(jnp.bfloat16)           # (E, E)
    wo_t = params["wo"].T.astype(jnp.bfloat16)                              # (E, E)   (in, out)
    w1_t = params["w1"].T.astype(jnp.bfloat16)                              # (E, H_ff)
    w2_t = params["w2"].T.astype(jnp.bfloat16)                              # (H_ff, E)

    # Pack the six E-sized vectors into one (8, E) block: bo, g1, be1, bf2, g2, be2.
    pvec = jnp.zeros((8, E), jnp.float32)
    pvec = (pvec.at[0].set(params["bo"]).at[1].set(params["g1"]).at[2].set(params["be1"])
                 .at[3].set(params["bf2"]).at[4].set(params["g2"]).at[5].set(params["be2"]))
    bf1 = params["bf1"].reshape(1, H_ff).astype(jnp.float32)

    # Additive mask bias: 0 = keep, -1e20 = masked (per batch element).
    mask_b = jnp.broadcast_to(mask, (N, 1, L, L)).reshape(N, L, L)
    bias = jnp.where(mask_b == 0, jnp.float32(-1e20), jnp.float32(0.0))

    key_b = key.astype(jnp.bfloat16)
    val_b = value.astype(jnp.bfloat16)

    kernel = _make_kernel(heads, D)

    def cspec(shape):
        return pl.BlockSpec(shape, lambda n: (0,) * len(shape))

    in_specs = [
        pl.BlockSpec((None, L, E), lambda n: (n, 0, 0)),    # query (fp32: matmul + residual)
        pl.BlockSpec((None, L, E), lambda n: (n, 0, 0)),    # key   (bf16)
        pl.BlockSpec((None, L, E), lambda n: (n, 0, 0)),    # value (bf16)
        pl.BlockSpec((None, L, L), lambda n: (n, 0, 0)),    # additive mask bias
        cspec((E, E)), cspec((E, E)), cspec((E, E)),        # wq_bd, wk_bd, wv_bd
        cspec((E, E)),                                      # wo_t
        cspec((E, H_ff)), cspec((H_ff, E)),                 # w1_t, w2_t
        cspec((8, E)), cspec((1, H_ff)),                    # packed vectors, bf1
    ]

    fn = pl.pallas_call(
        kernel,
        out_shape=jax.ShapeDtypeStruct((N, L, E), jnp.float32),
        grid=(N,),
        in_specs=in_specs,
        out_specs=pl.BlockSpec((None, L, E), lambda n: (n, 0, 0)),
        compiler_params=pltpu.CompilerParams(
            dimension_semantics=("parallel",),
            vmem_limit_bytes=32 * 1024 * 1024),
    )

    return fn(query, key_b, val_b, bias,
              wq_bd, wk_bd, wv_bd, wo_t, w1_t, w2_t, pvec, bf1)


def reference(value, key, query, mask, p, heads):
    """Pure-JAX fp32 replica of the PyTorch forward, for validation."""
    N, L, E = query.shape
    D = E // heads
    v = value.reshape(N, L, heads, D) @ p["wv"].T
    k = key.reshape(N, L, heads, D) @ p["wk"].T
    q = query.reshape(N, L, heads, D) @ p["wq"].T
    energy = jnp.einsum("nqhd,nkhd->nhqk", q, k)
    energy = jnp.where(mask == 0, jnp.float32(-1e20), energy)
    attn = jax.nn.softmax(energy / math.sqrt(E), axis=3)
    out = jnp.einsum("nhql,nlhd->nqhd", attn, v).reshape(N, L, E)
    out = out @ p["wo"].T + p["bo"]

    def ln(x, g, b):
        mu = x.mean(-1, keepdims=True)
        var = ((x - mu) ** 2).mean(-1, keepdims=True)
        return (x - mu) / jnp.sqrt(var + 1e-5) * g + b

    x = ln(out + query, p["g1"], p["be1"])
    h1 = jax.nn.relu(x @ p["w1"].T + p["bf1"])
    ff = h1 @ p["w2"].T + p["bf2"]
    return ln(ff + x, p["g2"], p["be2"])


if __name__ == "__main__":
    # Small shapes consistent with the module; E=128 keeps everything lane-dense.
    N, L, E, HEADS, FWD_EXP = 2, 16, 128, 8, 4
    D = E // HEADS
    H_FF = FWD_EXP * E

    root = jax.random.PRNGKey(0)
    keys = jax.random.split(root, 12)

    params = {
        "wv":  jax.random.normal(keys[0], (D, D), jnp.float32) * 0.1,
        "wk":  jax.random.normal(keys[1], (D, D), jnp.float32) * 0.1,
        "wq":  jax.random.normal(keys[2], (D, D), jnp.float32) * 0.1,
        "wo":  jax.random.normal(keys[3], (E, E), jnp.float32) * 0.1,
        "bo":  jax.random.normal(keys[4], (E,), jnp.float32) * 0.1,
        "g1":  jnp.ones((E,), jnp.float32),
        "be1": jnp.zeros((E,), jnp.float32),
        "w1":  jax.random.normal(keys[5], (H_FF, E), jnp.float32) * 0.1,
        "bf1": jax.random.normal(keys[6], (H_FF,), jnp.float32) * 0.1,
        "w2":  jax.random.normal(keys[7], (E, H_FF), jnp.float32) * 0.1,
        "bf2": jax.random.normal(keys[8], (E,), jnp.float32) * 0.1,
        "g2":  jnp.ones((E,), jnp.float32),
        "be2": jnp.zeros((E,), jnp.float32),
    }

    value = jax.random.normal(keys[9], (N, L, E), jnp.float32)
    key_t = jax.random.normal(keys[10], (N, L, E), jnp.float32)
    query = jax.random.normal(keys[11], (N, L, E), jnp.float32)
    # causal mask (N, 1, L, L): 1 = keep, 0 = masked
    mask = jnp.tril(jnp.ones((L, L), jnp.float32))[None, None].repeat(N, axis=0)

    out = transformer_block(value, key_t, query, mask, params, HEADS)
    out = jax.block_until_ready(out)

    ref = reference(value, key_t, query, mask, params, HEADS)
    assert out.shape == (N, L, E)
    err = float(jnp.max(jnp.abs(out - ref)))
    # Tolerance accommodates bf16 MXU operands and the EUP approximate reciprocal
    # in the softmax denominator (reference is pure fp32).
    assert jnp.allclose(out, ref, atol=5e-2, rtol=5e-2), f"max abs err = {err}"

    print("KERNEL_OK")
</pallas_src>

<mosaic_0001>
module attributes {stable_mosaic.version = 11 : i64} {
  func.func @kernel(%arg0: i32, %arg1: memref<1x16x128xf32, #tpu.memory_space<vmem>>, %arg2: memref<1x16x128xbf16, #tpu.memory_space<vmem>>, %arg3: memref<1x16x128xbf16, #tpu.memory_space<vmem>>, %arg4: memref<1x16x16xf32, #tpu.memory_space<vmem>>, %arg5: memref<128x128xbf16, #tpu.memory_space<vmem>>, %arg6: memref<128x128xbf16, #tpu.memory_space<vmem>>, %arg7: memref<128x128xbf16, #tpu.memory_space<vmem>>, %arg8: memref<128x128xbf16, #tpu.memory_space<vmem>>, %arg9: memref<128x512xbf16, #tpu.memory_space<vmem>>, %arg10: memref<512x128xbf16, #tpu.memory_space<vmem>>, %arg11: memref<8x128xf32, #tpu.memory_space<vmem>>, %arg12: memref<1x512xf32, #tpu.memory_space<vmem>>, %arg13: memref<1x16x128xf32, #tpu.memory_space<vmem>>) attributes {dimension_semantics = [#tpu.dimension_semantics<parallel>], iteration_bounds = array<i64: 2>, scalar_prefetch = 0 : i64, scratch_operands = 0 : i64, tpu.core_type = #tpu.core_type<tc>, window_params = [{transform_indices = @transform_0, window_bounds = array<i64: 1, 16, 128>}, {transform_indices = @transform_1, window_bounds = array<i64: 1, 16, 128>}, {transform_indices = @transform_2, window_bounds = array<i64: 1, 16, 128>}, {transform_indices = @transform_3, window_bounds = array<i64: 1, 16, 16>}, {pipeline_mode = #tpu.pipeline_mode<synchronous>, transform_indices = @transform_4, window_bounds = array<i64: 128, 128>}, {pipeline_mode = #tpu.pipeline_mode<synchronous>, transform_indices = @transform_5, window_bounds = array<i64: 128, 128>}, {pipeline_mode = #tpu.pipeline_mode<synchronous>, transform_indices = @transform_6, window_bounds = array<i64: 128, 128>}, {pipeline_mode = #tpu.pipeline_mode<synchronous>, transform_indices = @transform_7, window_bounds = array<i64: 128, 128>}, {pipeline_mode = #tpu.pipeline_mode<synchronous>, transform_indices = @transform_8, window_bounds = array<i64: 128, 512>}, {pipeline_mode = #tpu.pipeline_mode<synchronous>, transform_indices = @transform_9, window_bounds = array<i64: 512, 128>}, {pipeline_mode = #tpu.pipeline_mode<synchronous>, transform_indices = @transform_10, window_bounds = array<i64: 8, 128>}, {pipeline_mode = #tpu.pipeline_mode<synchronous>, transform_indices = @transform_11, window_bounds = array<i64: 1, 512>}, {transform_indices = @transform_12, window_bounds = array<i64: 1, 16, 128>}]} {
    %c0 = arith.constant 0 : index
    %c0_0 = arith.constant 0 : index
    %c0_1 = arith.constant 0 : index
    %0 = vector.load %arg1[%c0, %c0_0, %c0_1] : memref<1x16x128xf32, #tpu.memory_space<vmem>>, vector<1x16x128xf32>
    %1 = vector.shape_cast %0 : vector<1x16x128xf32> to vector<16x128xf32>
    %2 = arith.truncf %1 : vector<16x128xf32> to vector<16x128xbf16>
    %c0_2 = arith.constant 0 : index
    %c0_3 = arith.constant 0 : index
    %c0_4 = arith.constant 0 : index
    %3 = vector.load %arg2[%c0_2, %c0_3, %c0_4] : memref<1x16x128xbf16, #tpu.memory_space<vmem>>, vector<1x16x128xbf16>
    %4 = vector.shape_cast %3 : vector<1x16x128xbf16> to vector<16x128xbf16>
    %c0_5 = arith.constant 0 : index
    %c0_6 = arith.constant 0 : index
    %c0_7 = arith.constant 0 : index
    %5 = vector.load %arg3[%c0_5, %c0_6, %c0_7] : memref<1x16x128xbf16, #tpu.memory_space<vmem>>, vector<1x16x128xbf16>
    %6 = vector.shape_cast %5 : vector<1x16x128xbf16> to vector<16x128xbf16>
    %c0_8 = arith.constant 0 : index
    %c0_9 = arith.constant 0 : index
    %7 = vector.load %arg5[%c0_8, %c0_9] : memref<128x128xbf16, #tpu.memory_space<vmem>>, vector<128x128xbf16>
    %cst = arith.constant dense<0.000000e+00> : vector<16x128xf32>
    %8 = tpu.matmul %2, %7, %cst {dimension_numbers = #tpu.dot_dimension_numbers<[1], [0], [0], [1], [0, 0, 1, 1], [], []>} : vector<16x128xbf16>, vector<128x128xbf16>, vector<16x128xf32> -> vector<16x128xf32>
    %c0_10 = arith.constant 0 : index
    %c0_11 = arith.constant 0 : index
    %9 = vector.load %arg6[%c0_10, %c0_11] : memref<128x128xbf16, #tpu.memory_space<vmem>>, vector<128x128xbf16>
    %cst_12 = arith.constant dense<0.000000e+00> : vector<16x128xf32>
    %10 = tpu.matmul %4, %9, %cst_12 {dimension_numbers = #tpu.dot_dimension_numbers<[1], [0], [0], [1], [0, 0, 1, 1], [], []>} : vector<16x128xbf16>, vector<128x128xbf16>, vector<16x128xf32> -> vector<16x128xf32>
    %c0_13 = arith.constant 0 : index
    %c0_14 = arith.constant 0 : index
    %11 = vector.load %arg7[%c0_13, %c0_14] : memref<128x128xbf16, #tpu.memory_space<vmem>>, vector<128x128xbf16>
    %cst_15 = arith.constant dense<0.000000e+00> : vector<16x128xf32>
    %12 = tpu.matmul %6, %11, %cst_15 {dimension_numbers = #tpu.dot_dimension_numbers<[1], [0], [0], [1], [0, 0, 1, 1], [], []>} : vector<16x128xbf16>, vector<128x128xbf16>, vector<16x128xf32> -> vector<16x128xf32>
    %c0_16 = arith.constant 0 : index
    %c0_17 = arith.constant 0 : index
    %c0_18 = arith.constant 0 : index
    %13 = vector.load %arg4[%c0_16, %c0_17, %c0_18] : memref<1x16x16xf32, #tpu.memory_space<vmem>>, vector<1x16x16xf32>
    %14 = vector.shape_cast %13 : vector<1x16x16xf32> to vector<16x16xf32>
    %cst_19 = arith.constant 0.000000e+00 : f32
    %15 = vector.broadcast %cst_19 : f32 to vector<16x128xf32>
    %16 = vector.extract_strided_slice %8 {offsets = [0, 0], sizes = [16, 16], strides = [1, 1]} : vector<16x128xf32> to vector<16x16xf32>
    %17 = arith.truncf %16 : vector<16x16xf32> to vector<16x16xbf16>
    %18 = vector.extract_strided_slice %10 {offsets = [0, 0], sizes = [16, 16], strides = [1, 1]} : vector<16x128xf32> to vector<16x16xf32>
    %19 = arith.truncf %18 : vector<16x16xf32> to vector<16x16xbf16>
    %20 = vector.extract_strided_slice %12 {offsets = [0, 0], sizes = [16, 16], strides = [1, 1]} : vector<16x128xf32> to vector<16x16xf32>
    %21 = arith.truncf %20 : vector<16x16xf32> to vector<16x16xbf16>
    "tpu.trace_start"() <{level = 10 : i32, message = "qd,kd->qk"}> : () -> ()
    %cst_20 = arith.constant dense<0.000000e+00> : vector<16x16xf32>
    %22 = tpu.matmul %17, %19, %cst_20 {dimension_numbers = #tpu.dot_dimension_numbers<[1], [1], [0], [0], [0, 0, 1, 0], [], []>} : vector<16x16xbf16>, vector<16x16xbf16>, vector<16x16xf32> -> vector<16x16xf32>
    "tpu.trace_stop"() : () -> ()
    %23 = arith.addf %22, %14 : vector<16x16xf32>
    %cst_21 = arith.constant dense<0xFF800000> : vector<16xf32>
    %24 = vector.multi_reduction <maximumf>, %23, %cst_21 [1] : vector<16x16xf32> to vector<16xf32>
    %25 = vector.shape_cast %24 : vector<16xf32> to vector<16x1xf32>
    %26 = vector.broadcast %25 : vector<16x1xf32> to vector<16x16xf32>
    %27 = arith.subf %23, %26 : vector<16x16xf32>
    %28 = math.exp %27 : vector<16x16xf32>
    %cst_22 = arith.constant dense<0.000000e+00> : vector<16xf32>
    %29 = vector.multi_reduction <add>, %28, %cst_22 [1] : vector<16x16xf32> to vector<16xf32>
    %30 = vector.shape_cast %29 : vector<16xf32> to vector<16x1xf32>
    %31 = tpu.reciprocal %30 {approx = true} : vector<16x1xf32> -> vector<16x1xf32>
    %32 = vector.broadcast %31 : vector<16x1xf32> to vector<16x16xf32>
    %33 = arith.mulf %28, %32 : vector<16x16xf32>
    %34 = arith.truncf %33 : vector<16x16xf32> to vector<16x16xbf16>
    %cst_23 = arith.constant dense<0.000000e+00> : vector<16x16xf32>
    %35 = tpu.matmul %34, %21, %cst_23 {dimension_numbers = #tpu.dot_dimension_numbers<[1], [0], [0], [1], [0, 0, 1, 1], [], []>} : vector<16x16xbf16>, vector<16x16xbf16>, vector<16x16xf32> -> vector<16x16xf32>
    %36 = arith.truncf %35 : vector<16x16xf32> to vector<16x16xbf16>
    %c0_24 = arith.constant 0 : index
    %c0_25 = arith.constant 0 : index
    %37 = vector.load %arg8[%c0_24, %c0_25] : memref<128x128xbf16, #tpu.memory_space<vmem>>, vector<16x128xbf16>
    %cst_26 = arith.constant dense<0.000000e+00> : vector<16x128xf32>
    %38 = tpu.matmul %36, %37, %cst_26 {dimension_numbers = #tpu.dot_dimension_numbers<[1], [0], [0], [1], [0, 0, 1, 1], [], []>} : vector<16x16xbf16>, vector<16x128xbf16>, vector<16x128xf32> -> vector<16x128xf32>
    %39 = arith.addf %15, %38 : vector<16x128xf32>
    %40 = vector.extract_strided_slice %8 {offsets = [0, 16], sizes = [16, 16], strides = [1, 1]} : vector<16x128xf32> to vector<16x16xf32>
    %41 = arith.truncf %40 : vector<16x16xf32> to vector<16x16xbf16>
    %42 = vector.extract_strided_slice %10 {offsets = [0, 16], sizes = [16, 16], strides = [1, 1]} : vector<16x128xf32> to vector<16x16xf32>
    %43 = arith.truncf %42 : vector<16x16xf32> to vector<16x16xbf16>
    %44 = vector.extract_strided_slice %12 {offsets = [0, 16], sizes = [16, 16], strides = [1, 1]} : vector<16x128xf32> to vector<16x16xf32>
    %45 = arith.truncf %44 : vector<16x16xf32> to vector<16x16xbf16>
    "tpu.trace_start"() <{level = 10 : i32, message = "qd,kd->qk"}> : () -> ()
    %cst_27 = arith.constant dense<0.000000e+00> : vector<16x16xf32>
    %46 = tpu.matmul %41, %43, %cst_27 {dimension_numbers = #tpu.dot_dimension_numbers<[1], [1], [0], [0], [0, 0, 1, 0], [], []>} : vector<16x16xbf16>, vector<16x16xbf16>, vector<16x16xf32> -> vector<16x16xf32>
    "tpu.trace_stop"() : () -> ()
    %47 = arith.addf %46, %14 : vector<16x16xf32>
    %cst_28 = arith.constant dense<0xFF800000> : vector<16xf32>
    %48 = vector.multi_reduction <maximumf>, %47, %cst_28 [1] : vector<16x16xf32> to vector<16xf32>
    %49 = vector.shape_cast %48 : vector<16xf32> to vector<16x1xf32>
    %50 = vector.broadcast %49 : vector<16x1xf32> to vector<16x16xf32>
    %51 = arith.subf %47, %50 : vector<16x16xf32>
    %52 = math.exp %51 : vector<16x16xf32>
    %cst_29 = arith.constant dense<0.000000e+00> : vector<16xf32>
    %53 = vector.multi_reduction <add>, %52, %cst_29 [1] : vector<16x16xf32> to vector<16xf32>
    %54 = vector.shape_cast %53 : vector<16xf32> to vector<16x1xf32>
    %55 = tpu.reciprocal %54 {approx = true} : vector<16x1xf32> -> vector<16x1xf32>
    %56 = vector.broadcast %55 : vector<16x1xf32> to vector<16x16xf32>
    %57 = arith.mulf %52, %56 : vector<16x16xf32>
    %58 = arith.truncf %57 : vector<16x16xf32> to vector<16x16xbf16>
    %cst_30 = arith.constant dense<0.000000e+00> : vector<16x16xf32>
    %59 = tpu.matmul %58, %45, %cst_30 {dimension_numbers = #tpu.dot_dimension_numbers<[1], [0], [0], [1], [0, 0, 1, 1], [], []>} : vector<16x16xbf16>, vector<16x16xbf16>, vector<16x16xf32> -> vector<16x16xf32>
    %60 = arith.truncf %59 : vector<16x16xf32> to vector<16x16xbf16>
    %c16 = arith.constant 16 : index
    %c0_31 = arith.constant 0 : index
    %61 = vector.load %arg8[%c16, %c0_31] : memref<128x128xbf16, #tpu.memory_space<vmem>>, vector<16x128xbf16>
    %cst_32 = arith.constant dense<0.000000e+00> : vector<16x128xf32>
    %62 = tpu.matmul %60, %61, %cst_32 {dimension_numbers = #tpu.dot_dimension_numbers<[1], [0], [0], [1], [0, 0, 1, 1], [], []>} : vector<16x16xbf16>, vector<16x128xbf16>, vector<16x128xf32> -> vector<16x128xf32>
    %63 = arith.addf %39, %62 : vector<16x128xf32>
    %64 = vector.extract_strided_slice %8 {offsets = [0, 32], sizes = [16, 16], strides = [1, 1]} : vector<16x128xf32> to vector<16x16xf32>
    %65 = arith.truncf %64 : vector<16x16xf32> to vector<16x16xbf16>
    %66 = vector.extract_strided_slice %10 {offsets = [0, 32], sizes = [16, 16], strides = [1, 1]} : vector<16x128xf32> to vector<16x16xf32>
    %67 = arith.truncf %66 : vector<16x16xf32> to vector<16x16xbf16>
    %68 = vector.extract_strided_slice %12 {offsets = [0, 32], sizes = [16, 16], strides = [1, 1]} : vector<16x128xf32> to vector<16x16xf32>
    %69 = arith.truncf %68 : vector<16x16xf32> to vector<16x16xbf16>
    "tpu.trace_start"() <{level = 10 : i32, message = "qd,kd->qk"}> : () -> ()
    %cst_33 = arith.constant dense<0.000000e+00> : vector<16x16xf32>
    %70 = tpu.matmul %65, %67, %cst_33 {dimension_numbers = #tpu.dot_dimension_numbers<[1], [1], [0], [0], [0, 0, 1, 0], [], []>} : vector<16x16xbf16>, vector<16x16xbf16>, vector<16x16xf32> -> vector<16x16xf32>
    "tpu.trace_stop"() : () -> ()
    %71 = arith.addf %70, %14 : vector<16x16xf32>
    %cst_34 = arith.constant dense<0xFF800000> : vector<16xf32>
    %72 = vector.multi_reduction <maximumf>, %71, %cst_34 [1] : vector<16x16xf32> to vector<16xf32>
    %73 = vector.shape_cast %72 : vector<16xf32> to vector<16x1xf32>
    %74 = vector.broadcast %73 : vector<16x1xf32> to vector<16x16xf32>
    %75 = arith.subf %71, %74 : vector<16x16xf32>
    %76 = math.exp %75 : vector<16x16xf32>
    %cst_35 = arith.constant dense<0.000000e+00> : vector<16xf32>
    %77 = vector.multi_reduction <add>, %76, %cst_35 [1] : vector<16x16xf32> to vector<16xf32>
    %78 = vector.shape_cast %77 : vector<16xf32> to vector<16x1xf32>
    %79 = tpu.reciprocal %78 {approx = true} : vector<16x1xf32> -> vector<16x1xf32>
    %80 = vector.broadcast %79 : vector<16x1xf32> to vector<16x16xf32>
    %81 = arith.mulf %76, %80 : vector<16x16xf32>
    %82 = arith.truncf %81 : vector<16x16xf32> to vector<16x16xbf16>
    %cst_36 = arith.constant dense<0.000000e+00> : vector<16x16xf32>
    %83 = tpu.matmul %82, %69, %cst_36 {dimension_numbers = #tpu.dot_dimension_numbers<[1], [0], [0], [1], [0, 0, 1, 1], [], []>} : vector<16x16xbf16>, vector<16x16xbf16>, vector<16x16xf32> -> vector<16x16xf32>
    %84 = arith.truncf %83 : vector<16x16xf32> to vector<16x16xbf16>
    %c32 = arith.constant 32 : index
    %c0_37 = arith.constant 0 : index
    %85 = vector.load %arg8[%c32, %c0_37] : memref<128x128xbf16, #tpu.memory_space<vmem>>, vector<16x128xbf16>
    %cst_38 = arith.constant dense<0.000000e+00> : vector<16x128xf32>
    %86 = tpu.matmul %84, %85, %cst_38 {dimension_numbers = #tpu.dot_dimension_numbers<[1], [0], [0], [1], [0, 0, 1, 1], [], []>} : vector<16x16xbf16>, vector<16x128xbf16>, vector<16x128xf32> -> vector<16x128xf32>
    %87 = arith.addf %63, %86 : vector<16x128xf32>
    %88 = vector.extract_strided_slice %8 {offsets = [0, 48], sizes = [16, 16], strides = [1, 1]} : vector<16x128xf32> to vector<16x16xf32>
    %89 = arith.truncf %88 : vector<16x16xf32> to vector<16x16xbf16>
    %90 = vector.extract_strided_slice %10 {offsets = [0, 48], sizes = [16, 16], strides = [1, 1]} : vector<16x128xf32> to vector<16x16xf32>
    %91 = arith.truncf %90 : vector<16x16xf32> to vector<16x16xbf16>
    %92 = vector.extract_strided_slice %12 {offsets = [0, 48], sizes = [16, 16], strides = [1, 1]} : vector<16x128xf32> to vector<16x16xf32>
    %93 = arith.truncf %92 : vector<16x16xf32> to vector<16x16xbf16>
    "tpu.trace_start"() <{level = 10 : i32, message = "qd,kd->qk"}> : () -> ()
    %cst_39 = arith.constant dense<0.000000e+00> : vector<16x16xf32>
    %94 = tpu.matmul %89, %91, %cst_39 {dimension_numbers = #tpu.dot_dimension_numbers<[1], [1], [0], [0], [0, 0, 1, 0], [], []>} : vector<16x16xbf16>, vector<16x16xbf16>, vector<16x16xf32> -> vector<16x16xf32>
    "tpu.trace_stop"() : () -> ()
    %95 = arith.addf %94, %14 : vector<16x16xf32>
    %cst_40 = arith.constant dense<0xFF800000> : vector<16xf32>
    %96 = vector.multi_reduction <maximumf>, %95, %cst_40 [1] : vector<16x16xf32> to vector<16xf32>
    %97 = vector.shape_cast %96 : vector<16xf32> to vector<16x1xf32>
    %98 = vector.broadcast %97 : vector<16x1xf32> to vector<16x16xf32>
    %99 = arith.subf %95, %98 : vector<16x16xf32>
    %100 = math.exp %99 : vector<16x16xf32>
    %cst_41 = arith.constant dense<0.000000e+00> : vector<16xf32>
    %101 = vector.multi_reduction <add>, %100, %cst_41 [1] : vector<16x16xf32> to vector<16xf32>
    %102 = vector.shape_cast %101 : vector<16xf32> to vector<16x1xf32>
    %103 = tpu.reciprocal %102 {approx = true} : vector<16x1xf32> -> vector<16x1xf32>
    %104 = vector.broadcast %103 : vector<16x1xf32> to vector<16x16xf32>
    %105 = arith.mulf %100, %104 : vector<16x16xf32>
    %106 = arith.truncf %105 : vector<16x16xf32> to vector<16x16xbf16>
    %cst_42 = arith.constant dense<0.000000e+00> : vector<16x16xf32>
    %107 = tpu.matmul %106, %93, %cst_42 {dimension_numbers = #tpu.dot_dimension_numbers<[1], [0], [0], [1], [0, 0, 1, 1], [], []>} : vector<16x16xbf16>, vector<16x16xbf16>, vector<16x16xf32> -> vector<16x16xf32>
    %108 = arith.truncf %107 : vector<16x16xf32> to vector<16x16xbf16>
    %c48 = arith.constant 48 : index
    %c0_43 = arith.constant 0 : index
    %109 = vector.load %arg8[%c48, %c0_43] : memref<128x128xbf16, #tpu.memory_space<vmem>>, vector<16x128xbf16>
    %cst_44 = arith.constant dense<0.000000e+00> : vector<16x128xf32>
    %110 = tpu.matmul %108, %109, %cst_44 {dimension_numbers = #tpu.dot_dimension_numbers<[1], [0], [0], [1], [0, 0, 1, 1], [], []>} : vector<16x16xbf16>, vector<16x128xbf16>, vector<16x128xf32> -> vector<16x128xf32>
    %111 = arith.addf %87, %110 : vector<16x128xf32>
    %112 = vector.extract_strided_slice %8 {offsets = [0, 64], sizes = [16, 16], strides = [1, 1]} : vector<16x128xf32> to vector<16x16xf32>
    %113 = arith.truncf %112 : vector<16x16xf32> to vector<16x16xbf16>
    %114 = vector.extract_strided_slice %10 {offsets = [0, 64], sizes = [16, 16], strides = [1, 1]} : vector<16x128xf32> to vector<16x16xf32>
    %115 = arith.truncf %114 : vector<16x16xf32> to vector<16x16xbf16>
    %116 = vector.extract_strided_slice %12 {offsets = [0, 64], sizes = [16, 16], strides = [1, 1]} : vector<16x128xf32> to vector<16x16xf32>
    %117 = arith.truncf %116 : vector<16x16xf32> to vector<16x16xbf16>
    "tpu.trace_start"() <{level = 10 : i32, message = "qd,kd->qk"}> : () -> ()
    %cst_45 = arith.constant dense<0.000000e+00> : vector<16x16xf32>
    %118 = tpu.matmul %113, %115, %cst_45 {dimension_numbers = #tpu.dot_dimension_numbers<[1], [1], [0], [0], [0, 0, 1, 0], [], []>} : vector<16x16xbf16>, vector<16x16xbf16>, vector<16x16xf32> -> vector<16x16xf32>
    "tpu.trace_stop"() : () -> ()
    %119 = arith.addf %118, %14 : vector<16x16xf32>
    %cst_46 = arith.constant dense<0xFF800000> : vector<16xf32>
    %120 = vector.multi_reduction <maximumf>, %119, %cst_46 [1] : vector<16x16xf32> to vector<16xf32>
    %121 = vector.shape_cast %120 : vector<16xf32> to vector<16x1xf32>
    %122 = vector.broadcast %121 : vector<16x1xf32> to vector<16x16xf32>
    %123 = arith.subf %119, %122 : vector<16x16xf32>
    %124 = math.exp %123 : vector<16x16xf32>
    %cst_47 = arith.constant dense<0.000000e+00> : vector<16xf32>
    %125 = vector.multi_reduction <add>, %124, %cst_47 [1] : vector<16x16xf32> to vector<16xf32>
    %126 = vector.shape_cast %125 : vector<16xf32> to vector<16x1xf32>
    %127 = tpu.reciprocal %126 {approx = true} : vector<16x1xf32> -> vector<16x1xf32>
    %128 = vector.broadcast %127 : vector<16x1xf32> to vector<16x16xf32>
    %129 = arith.mulf %124, %128 : vector<16x16xf32>
    %130 = arith.truncf %129 : vector<16x16xf32> to vector<16x16xbf16>
    %cst_48 = arith.constant dense<0.000000e+00> : vector<16x16xf32>
    %131 = tpu.matmul %130, %117, %cst_48 {dimension_numbers = #tpu.dot_dimension_numbers<[1], [0], [0], [1], [0, 0, 1, 1], [], []>} : vector<16x16xbf16>, vector<16x16xbf16>, vector<16x16xf32> -> vector<16x16xf32>
    %132 = arith.truncf %131 : vector<16x16xf32> to vector<16x16xbf16>
    %c64 = arith.constant 64 : index
    %c0_49 = arith.constant 0 : index
    %133 = vector.load %arg8[%c64, %c0_49] : memref<128x128xbf16, #tpu.memory_space<vmem>>, vector<16x128xbf16>
    %cst_50 = arith.constant dense<0.000000e+00> : vector<16x128xf32>
    %134 = tpu.matmul %132, %133, %cst_50 {dimension_numbers = #tpu.dot_dimension_numbers<[1], [0], [0], [1], [0, 0, 1, 1], [], []>} : vector<16x16xbf16>, vector<16x128xbf16>, vector<16x128xf32> -> vector<16x128xf32>
    %135 = arith.addf %111, %134 : vector<16x128xf32>
    %136 = vector.extract_strided_slice %8 {offsets = [0, 80], sizes = [16, 16], strides = [1, 1]} : vector<16x128xf32> to vector<16x16xf32>
    %137 = arith.truncf %136 : vector<16x16xf32> to vector<16x16xbf16>
    %138 = vector.extract_strided_slice %10 {offsets = [0, 80], sizes = [16, 16], strides = [1, 1]} : vector<16x128xf32> to vector<16x16xf32>
    %139 = arith.truncf %138 : vector<16x16xf32> to vector<16x16xbf16>
    %140 = vector.extract_strided_slice %12 {offsets = [0, 80], sizes = [16, 16], strides = [1, 1]} : vector<16x128xf32> to vector<16x16xf32>
    %141 = arith.truncf %140 : vector<16x16xf32> to vector<16x16xbf16>
    "tpu.trace_start"() <{level = 10 : i32, message = "qd,kd->qk"}> : () -> ()
    %cst_51 = arith.constant dense<0.000000e+00> : vector<16x16xf32>
    %142 = tpu.matmul %137, %139, %cst_51 {dimension_numbers = #tpu.dot_dimension_numbers<[1], [1], [0], [0], [0, 0, 1, 0], [], []>} : vector<16x16xbf16>, vector<16x16xbf16>, vector<16x16xf32> -> vector<16x16xf32>
    "tpu.trace_stop"() : () -> ()
    %143 = arith.addf %142, %14 : vector<16x16xf32>
    %cst_52 = arith.constant dense<0xFF800000> : vector<16xf32>
    %144 = vector.multi_reduction <maximumf>, %143, %cst_52 [1] : vector<16x16xf32> to vector<16xf32>
    %145 = vector.shape_cast %144 : vector<16xf32> to vector<16x1xf32>
    %146 = vector.broadcast %145 : vector<16x1xf32> to vector<16x16xf32>
    %147 = arith.subf %143, %146 : vector<16x16xf32>
    %148 = math.exp %147 : vector<16x16xf32>
    %cst_53 = arith.constant dense<0.000000e+00> : vector<16xf32>
    %149 = vector.multi_reduction <add>, %148, %cst_53 [1] : vector<16x16xf32> to vector<16xf32>
    %150 = vector.shape_cast %149 : vector<16xf32> to vector<16x1xf32>
    %151 = tpu.reciprocal %150 {approx = true} : vector<16x1xf32> -> vector<16x1xf32>
    %152 = vector.broadcast %151 : vector<16x1xf32> to vector<16x16xf32>
    %153 = arith.mulf %148, %152 : vector<16x16xf32>
    %154 = arith.truncf %153 : vector<16x16xf32> to vector<16x16xbf16>
    %cst_54 = arith.constant dense<0.000000e+00> : vector<16x16xf32>
    %155 = tpu.matmul %154, %141, %cst_54 {dimension_numbers = #tpu.dot_dimension_numbers<[1], [0], [0], [1], [0, 0, 1, 1], [], []>} : vector<16x16xbf16>, vector<16x16xbf16>, vector<16x16xf32> -> vector<16x16xf32>
    %156 = arith.truncf %155 : vector<16x16xf32> to vector<16x16xbf16>
    %c80 = arith.constant 80 : index
    %c0_55 = arith.constant 0 : index
    %157 = vector.load %arg8[%c80, %c0_55] : memref<128x128xbf16, #tpu.memory_space<vmem>>, vector<16x128xbf16>
    %cst_56 = arith.constant dense<0.000000e+00> : vector<16x128xf32>
    %158 = tpu.matmul %156, %157, %cst_56 {dimension_numbers = #tpu.dot_dimension_numbers<[1], [0], [0], [1], [0, 0, 1, 1], [], []>} : vector<16x16xbf16>, vector<16x128xbf16>, vector<16x128xf32> -> vector<16x128xf32>
    %159 = arith.addf %135, %158 : vector<16x128xf32>
    %160 = vector.extract_strided_slice %8 {offsets = [0, 96], sizes = [16, 16], strides = [1, 1]} : vector<16x128xf32> to vector<16x16xf32>
    %161 = arith.truncf %160 : vector<16x16xf32> to vector<16x16xbf16>
    %162 = vector.extract_strided_slice %10 {offsets = [0, 96], sizes = [16, 16], strides = [1, 1]} : vector<16x128xf32> to vector<16x16xf32>
    %163 = arith.truncf %162 : vector<16x16xf32> to vector<16x16xbf16>
    %164 = vector.extract_strided_slice %12 {offsets = [0, 96], sizes = [16, 16], strides = [1, 1]} : vector<16x128xf32> to vector<16x16xf32>
    %165 = arith.truncf %164 : vector<16x16xf32> to vector<16x16xbf16>
    "tpu.trace_start"() <{level = 10 : i32, message = "qd,kd->qk"}> : () -> ()
    %cst_57 = arith.constant dense<0.000000e+00> : vector<16x16xf32>
    %166 = tpu.matmul %161, %163, %cst_57 {dimension_numbers = #tpu.dot_dimension_numbers<[1], [1], [0], [0], [0, 0, 1, 0], [], []>} : vector<16x16xbf16>, vector<16x16xbf16>, vector<16x16xf32> -> vector<16x16xf32>
    "tpu.trace_stop"() : () -> ()
    %167 = arith.addf %166, %14 : vector<16x16xf32>
    %cst_58 = arith.constant dense<0xFF800000> : vector<16xf32>
    %168 = vector.multi_reduction <maximumf>, %167, %cst_58 [1] : vector<16x16xf32> to vector<16xf32>
    %169 = vector.shape_cast %168 : vector<16xf32> to vector<16x1xf32>
    %170 = vector.broadcast %169 : vector<16x1xf32> to vector<16x16xf32>
    %171 = arith.subf %167, %170 : vector<16x16xf32>
    %172 = math.exp %171 : vector<16x16xf32>
    %cst_59 = arith.constant dense<0.000000e+00> : vector<16xf32>
    %173 = vector.multi_reduction <add>, %172, %cst_59 [1] : vector<16x16xf32> to vector<16xf32>
    %174 = vector.shape_cast %173 : vector<16xf32> to vector<16x1xf32>
    %175 = tpu.reciprocal %174 {approx = true} : vector<16x1xf32> -> vector<16x1xf32>
    %176 = vector.broadcast %175 : vector<16x1xf32> to vector<16x16xf32>
    %177 = arith.mulf %172, %176 : vector<16x16xf32>
    %178 = arith.truncf %177 : vector<16x16xf32> to vector<16x16xbf16>
    %cst_60 = arith.constant dense<0.000000e+00> : vector<16x16xf32>
    %179 = tpu.matmul %178, %165, %cst_60 {dimension_numbers = #tpu.dot_dimension_numbers<[1], [0], [0], [1], [0, 0, 1, 1], [], []>} : vector<16x16xbf16>, vector<16x16xbf16>, vector<16x16xf32> -> vector<16x16xf32>
    %180 = arith.truncf %179 : vector<16x16xf32> to vector<16x16xbf16>
    %c96 = arith.constant 96 : index
    %c0_61 = arith.constant 0 : index
    %181 = vector.load %arg8[%c96, %c0_61] : memref<128x128xbf16, #tpu.memory_space<vmem>>, vector<16x128xbf16>
    %cst_62 = arith.constant dense<0.000000e+00> : vector<16x128xf32>
    %182 = tpu.matmul %180, %181, %cst_62 {dimension_numbers = #tpu.dot_dimension_numbers<[1], [0], [0], [1], [0, 0, 1, 1], [], []>} : vector<16x16xbf16>, vector<16x128xbf16>, vector<16x128xf32> -> vector<16x128xf32>
    %183 = arith.addf %159, %182 : vector<16x128xf32>
    %184 = vector.extract_strided_slice %8 {offsets = [0, 112], sizes = [16, 16], strides = [1, 1]} : vector<16x128xf32> to vector<16x16xf32>
    %185 = arith.truncf %184 : vector<16x16xf32> to vector<16x16xbf16>
    %186 = vector.extract_strided_slice %10 {offsets = [0, 112], sizes = [16, 16], strides = [1, 1]} : vector<16x128xf32> to vector<16x16xf32>
    %187 = arith.truncf %186 : vector<16x16xf32> to vector<16x16xbf16>
    %188 = vector.extract_strided_slice %12 {offsets = [0, 112], sizes = [16, 16], strides = [1, 1]} : vector<16x128xf32> to vector<16x16xf32>
    %189 = arith.truncf %188 : vector<16x16xf32> to vector<16x16xbf16>
    "tpu.trace_start"() <{level = 10 : i32, message = "qd,kd->qk"}> : () -> ()
    %cst_63 = arith.constant dense<0.000000e+00> : vector<16x16xf32>
    %190 = tpu.matmul %185, %187, %cst_63 {dimension_numbers = #tpu.dot_dimension_numbers<[1], [1], [0], [0], [0, 0, 1, 0], [], []>} : vector<16x16xbf16>, vector<16x16xbf16>, vector<16x16xf32> -> vector<16x16xf32>
    "tpu.trace_stop"() : () -> ()
    %191 = arith.addf %190, %14 : vector<16x16xf32>
    %cst_64 = arith.constant dense<0xFF800000> : vector<16xf32>
    %192 = vector.multi_reduction <maximumf>, %191, %cst_64 [1] : vector<16x16xf32> to vector<16xf32>
    %193 = vector.shape_cast %192 : vector<16xf32> to vector<16x1xf32>
    %194 = vector.broadcast %193 : vector<16x1xf32> to vector<16x16xf32>
    %195 = arith.subf %191, %194 : vector<16x16xf32>
    %196 = math.exp %195 : vector<16x16xf32>
    %cst_65 = arith.constant dense<0.000000e+00> : vector<16xf32>
    %197 = vector.multi_reduction <add>, %196, %cst_65 [1] : vector<16x16xf32> to vector<16xf32>
    %198 = vector.shape_cast %197 : vector<16xf32> to vector<16x1xf32>
    %199 = tpu.reciprocal %198 {approx = true} : vector<16x1xf32> -> vector<16x1xf32>
    %200 = vector.broadcast %199 : vector<16x1xf32> to vector<16x16xf32>
    %201 = arith.mulf %196, %200 : vector<16x16xf32>
    %202 = arith.truncf %201 : vector<16x16xf32> to vector<16x16xbf16>
    %cst_66 = arith.constant dense<0.000000e+00> : vector<16x16xf32>
    %203 = tpu.matmul %202, %189, %cst_66 {dimension_numbers = #tpu.dot_dimension_numbers<[1], [0], [0], [1], [0, 0, 1, 1], [], []>} : vector<16x16xbf16>, vector<16x16xbf16>, vector<16x16xf32> -> vector<16x16xf32>
    %204 = arith.truncf %203 : vector<16x16xf32> to vector<16x16xbf16>
    %c112 = arith.constant 112 : index
    %c0_67 = arith.constant 0 : index
    %205 = vector.load %arg8[%c112, %c0_67] : memref<128x128xbf16, #tpu.memory_space<vmem>>, vector<16x128xbf16>
    %cst_68 = arith.constant dense<0.000000e+00> : vector<16x128xf32>
    %206 = tpu.matmul %204, %205, %cst_68 {dimension_numbers = #tpu.dot_dimension_numbers<[1], [0], [0], [1], [0, 0, 1, 1], [], []>} : vector<16x16xbf16>, vector<16x128xbf16>, vector<16x128xf32> -> vector<16x128xf32>
    %207 = arith.addf %183, %206 : vector<16x128xf32>
    %c0_69 = arith.constant 0 : index
    %c0_70 = arith.constant 0 : index
    %208 = vector.load %arg11[%c0_69, %c0_70] : memref<8x128xf32, #tpu.memory_space<vmem>>, vector<1x128xf32>
    %209 = vector.broadcast %208 : vector<1x128xf32> to vector<16x128xf32>
    %210 = arith.addf %207, %209 : vector<16x128xf32>
    %211 = arith.addf %210, %1 : vector<16x128xf32>
    %c1 = arith.constant 1 : index
    %c0_71 = arith.constant 0 : index
    %212 = vector.load %arg11[%c1, %c0_71] : memref<8x128xf32, #tpu.memory_space<vmem>>, vector<1x128xf32>
    %c2 = arith.constant 2 : index
    %c0_72 = arith.constant 0 : index
    %213 = vector.load %arg11[%c2, %c0_72] : memref<8x128xf32, #tpu.memory_space<vmem>>, vector<1x128xf32>
    %cst_73 = arith.constant dense<0.000000e+00> : vector<16xf32>
    %214 = vector.multi_reduction <add>, %211, %cst_73 [1] : vector<16x128xf32> to vector<16xf32>
    %215 = vector.shape_cast %214 : vector<16xf32> to vector<16x1xf32>
    %cst_74 = arith.constant 1.280000e+02 : f32
    %216 = vector.broadcast %cst_74 : f32 to vector<16x1xf32>
    %217 = arith.divf %215, %216 : vector<16x1xf32>
    %218 = vector.broadcast %217 : vector<16x1xf32> to vector<16x128xf32>
    %219 = arith.subf %211, %218 : vector<16x128xf32>
    %220 = arith.mulf %219, %219 : vector<16x128xf32>
    %cst_75 = arith.constant dense<0.000000e+00> : vector<16xf32>
    %221 = vector.multi_reduction <add>, %220, %cst_75 [1] : vector<16x128xf32> to vector<16xf32>
    %222 = vector.shape_cast %221 : vector<16xf32> to vector<16x1xf32>
    %cst_76 = arith.constant 1.280000e+02 : f32
    %223 = vector.broadcast %cst_76 : f32 to vector<16x1xf32>
    %224 = arith.divf %222, %223 : vector<16x1xf32>
    %225 = vector.broadcast %217 : vector<16x1xf32> to vector<16x128xf32>
    %226 = arith.subf %211, %225 : vector<16x128xf32>
    %cst_77 = arith.constant 9.99999974E-6 : f32
    %227 = vector.broadcast %cst_77 : f32 to vector<16x1xf32>
    %228 = arith.addf %224, %227 : vector<16x1xf32>
    %229 = math.rsqrt %228 : vector<16x1xf32>
    %230 = vector.broadcast %229 : vector<16x1xf32> to vector<16x128xf32>
    %231 = arith.mulf %226, %230 : vector<16x128xf32>
    %232 = vector.broadcast %212 : vector<1x128xf32> to vector<16x128xf32>
    %233 = arith.mulf %231, %232 : vector<16x128xf32>
    %234 = vector.broadcast %213 : vector<1x128xf32> to vector<16x128xf32>
    %235 = arith.addf %233, %234 : vector<16x128xf32>
    %236 = arith.truncf %235 : vector<16x128xf32> to vector<16x128xbf16>
    %c0_78 = arith.constant 0 : index
    %c0_79 = arith.constant 0 : index
    %237 = vector.load %arg9[%c0_78, %c0_79] : memref<128x512xbf16, #tpu.memory_space<vmem>>, vector<128x512xbf16>
    %cst_80 = arith.constant dense<0.000000e+00> : vector<16x512xf32>
    %238 = tpu.matmul %236, %237, %cst_80 {dimension_numbers = #tpu.dot_dimension_numbers<[1], [0], [0], [1], [0, 0, 1, 1], [], []>} : vector<16x128xbf16>, vector<128x512xbf16>, vector<16x512xf32> -> vector<16x512xf32>
    %c0_81 = arith.constant 0 : index
    %c0_82 = arith.constant 0 : index
    %239 = vector.load %arg12[%c0_81, %c0_82] : memref<1x512xf32, #tpu.memory_space<vmem>>, vector<1x512xf32>
    %240 = vector.broadcast %239 : vector<1x512xf32> to vector<16x512xf32>
    %241 = arith.addf %238, %240 : vector<16x512xf32>
    %cst_83 = arith.constant 0.000000e+00 : f32
    %242 = vector.broadcast %cst_83 : f32 to vector<16x512xf32>
    %243 = arith.maximumf %241, %242 : vector<16x512xf32>
    %244 = arith.truncf %243 : vector<16x512xf32> to vector<16x512xbf16>
    %c0_84 = arith.constant 0 : index
    %c0_85 = arith.constant 0 : index
    %245 = vector.load %arg10[%c0_84, %c0_85] : memref<512x128xbf16, #tpu.memory_space<vmem>>, vector<512x128xbf16>
    %cst_86 = arith.constant dense<0.000000e+00> : vector<16x128xf32>
    %246 = tpu.matmul %244, %245, %cst_86 {dimension_numbers = #tpu.dot_dimension_numbers<[1], [0], [0], [1], [0, 0, 1, 1], [], []>} : vector<16x512xbf16>, vector<512x128xbf16>, vector<16x128xf32> -> vector<16x128xf32>
    %c3 = arith.constant 3 : index
    %c0_87 = arith.constant 0 : index
    %247 = vector.load %arg11[%c3, %c0_87] : memref<8x128xf32, #tpu.memory_space<vmem>>, vector<1x128xf32>
    %248 = vector.broadcast %247 : vector<1x128xf32> to vector<16x128xf32>
    %249 = arith.addf %246, %248 : vector<16x128xf32>
    %250 = arith.addf %249, %235 : vector<16x128xf32>
    %c4 = arith.constant 4 : index
    %c0_88 = arith.constant 0 : index
    %251 = vector.load %arg11[%c4, %c0_88] : memref<8x128xf32, #tpu.memory_space<vmem>>, vector<1x128xf32>
    %c5 = arith.constant 5 : index
    %c0_89 = arith.constant 0 : index
    %252 = vector.load %arg11[%c5, %c0_89] : memref<8x128xf32, #tpu.memory_space<vmem>>, vector<1x128xf32>
    %cst_90 = arith.constant dense<0.000000e+00> : vector<16xf32>
    %253 = vector.multi_reduction <add>, %250, %cst_90 [1] : vector<16x128xf32> to vector<16xf32>
    %254 = vector.shape_cast %253 : vector<16xf32> to vector<16x1xf32>
    %cst_91 = arith.constant 1.280000e+02 : f32
    %255 = vector.broadcast %cst_91 : f32 to vector<16x1xf32>
    %256 = arith.divf %254, %255 : vector<16x1xf32>
    %257 = vector.broadcast %256 : vector<16x1xf32> to vector<16x128xf32>
    %258 = arith.subf %250, %257 : vector<16x128xf32>
    %259 = arith.mulf %258, %258 : vector<16x128xf32>
    %cst_92 = arith.constant dense<0.000000e+00> : vector<16xf32>
    %260 = vector.multi_reduction <add>, %259, %cst_92 [1] : vector<16x128xf32> to vector<16xf32>
    %261 = vector.shape_cast %260 : vector<16xf32> to vector<16x1xf32>
    %cst_93 = arith.constant 1.280000e+02 : f32
    %262 = vector.broadcast %cst_93 : f32 to vector<16x1xf32>
    %263 = arith.divf %261, %262 : vector<16x1xf32>
    %264 = vector.broadcast %256 : vector<16x1xf32> to vector<16x128xf32>
    %265 = arith.subf %250, %264 : vector<16x128xf32>
    %cst_94 = arith.constant 9.99999974E-6 : f32
    %266 = vector.broadcast %cst_94 : f32 to vector<16x1xf32>
    %267 = arith.addf %263, %266 : vector<16x1xf32>
    %268 = math.rsqrt %267 : vector<16x1xf32>
    %269 = vector.broadcast %268 : vector<16x1xf32> to vector<16x128xf32>
    %270 = arith.mulf %265, %269 : vector<16x128xf32>
    %271 = vector.broadcast %251 : vector<1x128xf32> to vector<16x128xf32>
    %272 = arith.mulf %270, %271 : vector<16x128xf32>
    %273 = vector.broadcast %252 : vector<1x128xf32> to vector<16x128xf32>
    %274 = arith.addf %272, %273 : vector<16x128xf32>
    %c0_95 = arith.constant 0 : index
    %c0_96 = arith.constant 0 : index
    %c0_97 = arith.constant 0 : index
    %275 = vector.load %arg13[%c0_95, %c0_96, %c0_97] : memref<1x16x128xf32, #tpu.memory_space<vmem>>, vector<1x16x128xf32>
    %276 = vector.shape_cast %275 : vector<1x16x128xf32> to vector<16x128xf32>
    %277 = vector.shape_cast %274 : vector<16x128xf32> to vector<1x16x128xf32>
    tpu.vector_store %arg13[%c0_95, %c0_96, %c0_97], %277 {strides = array<i32>} : memref<1x16x128xf32, #tpu.memory_space<vmem>>, vector<1x16x128xf32>,
    return
  }
  func.func @transform_0(%arg0: i32) -> (i32, i32, i32) {
    %c0_i32 = arith.constant 0 : i32
    %c0_i32_0 = arith.constant 0 : i32
    %c0_i32_1 = arith.constant 0 : i32
    return %arg0, %c0_i32, %c0_i32_0 : i32, i32, i32
  }
  func.func @transform_1(%arg0: i32) -> (i32, i32, i32) {
    %c0_i32 = arith.constant 0 : i32
    %c0_i32_0 = arith.constant 0 : i32
    %c0_i32_1 = arith.constant 0 : i32
    return %arg0, %c0_i32, %c0_i32_0 : i32, i32, i32
  }
  func.func @transform_2(%arg0: i32) -> (i32, i32, i32) {
    %c0_i32 = arith.constant 0 : i32
    %c0_i32_0 = arith.constant 0 : i32
    %c0_i32_1 = arith.constant 0 : i32
    return %arg0, %c0_i32, %c0_i32_0 : i32, i32, i32
  }
  func.func @transform_3(%arg0: i32) -> (i32, i32, i32) {
    %c0_i32 = arith.constant 0 : i32
    %c0_i32_0 = arith.constant 0 : i32
    %c0_i32_1 = arith.constant 0 : i32
    return %arg0, %c0_i32, %c0_i32_0 : i32, i32, i32
  }
  func.func @transform_4(%arg0: i32) -> (i32, i32) {
    %c0_i32 = arith.constant 0 : i32
    %c0_i32_0 = arith.constant 0 : i32
    %c0_i32_1 = arith.constant 0 : i32
    return %c0_i32, %c0_i32_0 : i32, i32
  }
  func.func @transform_5(%arg0: i32) -> (i32, i32) {
    %c0_i32 = arith.constant 0 : i32
    %c0_i32_0 = arith.constant 0 : i32
    %c0_i32_1 = arith.constant 0 : i32
    return %c0_i32, %c0_i32_0 : i32, i32
  }
  func.func @transform_6(%arg0: i32) -> (i32, i32) {
    %c0_i32 = arith.constant 0 : i32
    %c0_i32_0 = arith.constant 0 : i32
    %c0_i32_1 = arith.constant 0 : i32
    return %c0_i32, %c0_i32_0 : i32, i32
  }
  func.func @transform_7(%arg0: i32) -> (i32, i32) {
    %c0_i32 = arith.constant 0 : i32
    %c0_i32_0 = arith.constant 0 : i32
    %c0_i32_1 = arith.constant 0 : i32
    return %c0_i32, %c0_i32_0 : i32, i32
  }
  func.func @transform_8(%arg0: i32) -> (i32, i32) {
    %c0_i32 = arith.constant 0 : i32
    %c0_i32_0 = arith.constant 0 : i32
    %c0_i32_1 = arith.constant 0 : i32
    return %c0_i32, %c0_i32_0 : i32, i32
  }
  func.func @transform_9(%arg0: i32) -> (i32, i32) {
    %c0_i32 = arith.constant 0 : i32
    %c0_i32_0 = arith.constant 0 : i32
    %c0_i32_1 = arith.constant 0 : i32
    return %c0_i32, %c0_i32_0 : i32, i32
  }
  func.func @transform_10(%arg0: i32) -> (i32, i32) {
    %c0_i32 = arith.constant 0 : i32
    %c0_i32_0 = arith.constant 0 : i32
    %c0_i32_1 = arith.constant 0 : i32
    return %c0_i32, %c0_i32_0 : i32, i32
  }
  func.func @transform_11(%arg0: i32) -> (i32, i32) {
    %c0_i32 = arith.constant 0 : i32
    %c0_i32_0 = arith.constant 0 : i32
    %c0_i32_1 = arith.constant 0 : i32
    return %c0_i32, %c0_i32_0 : i32, i32
  }
  func.func @transform_12(%arg0: i32) -> (i32, i32, i32) {
    %c0_i32 = arith.constant 0 : i32
    %c0_i32_0 = arith.constant 0 : i32
    %c0_i32_1 = arith.constant 0 : i32
    return %arg0, %c0_i32, %c0_i32_0 : i32, i32, i32
  }
}

</mosaic_0001>

<bundles_post_ra>
// kernel: tpu_custom_call.1
= control target key start
LH: loop header
LB: loop body
LE: loop exit
PB: predicated region body
PF: predicated region fallthrough
CT: control target
= control target key end

     0   :  { %s5426_s0 = inlined_call_operand.hbm [shape: f32[2,16,128], index: 0, kind: input, shape index: {}]   ;;  %s5427_s1 = inlined_call_operand.hbm [shape: bf16[2,16,128], index: 1, kind: input, shape index: {}]   ;;  %s5428_s2 = inlined_call_operand.hbm [shape: bf16[2,16,128], index: 2, kind: input, shape index: {}]   ;;  %s5429_s3 = inlined_call_operand.hbm [shape: f32[2,16,16], index: 3, kind: input, shape index: {}]   ;;  %s5430_s4 = inlined_call_operand.hbm [shape: bf16[128,128], index: 4, kind: input, shape index: {}]   ;;  %s5431_s5 = inlined_call_operand.hbm [shape: bf16[128,128], index: 5, kind: input, shape index: {}]   ;;  %s5432_s6 = inlined_call_operand.hbm [shape: bf16[128,128], index: 6, kind: input, shape index: {}]   ;;  %s5433_s7 = inlined_call_operand.hbm [shape: bf16[128,128], index: 7, kind: input, shape index: {}]   ;;  %s5434_s8 = inlined_call_operand.hbm [shape: bf16[128,512], index: 8, kind: input, shape index: {}]   ;;  %s5435_s9 = inlined_call_operand.hbm [shape: bf16[512,128], index: 9, kind: input, shape index: {}]   ;;  %s5436_s10 = inlined_call_operand.vmem [shape: f32[8,128], index: 10, kind: input, shape index: {}]   ;;  %s5437_s11 = inlined_call_operand.vmem [shape: f32[1,512], index: 11, kind: input, shape index: {}]   ;;  %s5438_s12 = inlined_call_operand.hbm [shape: f32[2,16,128], index: 12, kind: output, shape index: {}]  }
   0x1   :  { %5472 = sst [smem:[#allocation38_spill]] %s5427_s1 }
   0x2   :  { %5473 = sst [smem:[#allocation39_spill]] %s5430_s4 }
   0x3   :  { %5474 = sst [smem:[#allocation40_spill]] %s5431_s5 }
   0x4   :  { %5475 = sst [smem:[#allocation41_spill]] %s5432_s6 }
   0x5   :  { %5476 = sst [smem:[#allocation42_spill]] %s5433_s7 }
   0x6   :  { %5477 = sst [smem:[#allocation43_spill]] %s5436_s10 }
   0x7   :  { %5478 = sst [smem:[#allocation44_spill]] %s5437_s11 }
   0x8   :  { %5479 = sst [smem:[#allocation45_spill]] %s5438_s12 }
   0x9   :  { %17 = vsyncpa [#allocation3], 0 }
   0xa   :  { %19 = vsyncpa [#allocation3 + $0x1], 0 }
   0xb   :  { %20 = vsyncpa [#allocation6], 0 }
   0xc   :  { %22 = vsyncpa [#allocation6 + $0x1], 0 }
   0xd   :  { %23 = vsyncpa [#allocation9], 0 }
   0xe   :  { %25 = vsyncpa [#allocation9 + $0x1], 0 }
   0xf   :  { %26 = vsyncpa [#allocation12], 0 }
  0x10   :  { %27 = vsyncpa [#allocation15], 0 }
  0x11   :  { %28 = vsyncpa [#allocation18], 0 }
  0x12   :  { %29 = vsyncpa [#allocation4], 0 }
  0x13   :  { %31 = vsyncpa [#allocation4 + $0x1], 0  ;;  %s4625_s21 = smov 0   ;;  %s4627_s22 = smov 0  }
  0x14   :  { %s4629_s23 = smov 0   ;;  %s4631_s24 = smov 0  }
  0x15 LB: > { %5480 = sst [smem:[#allocation28_spill]] %s4517_s21  ;;  %s4531_s25 = smov [#allocation10]   ;;  %s4529_s24 = sphi %s4631_s24, %s5536_s24   ;;  %s4525_s23 = sphi %s4629_s23, %s5539_s23   ;;  %s4521_s22 = sphi %s4627_s22, %s5538_s22   ;;  %s4517_s21 = sphi %s4625_s21, %s5537_s21  }
  0x16   : > { %5481 = sst [smem:[#allocation29_spill]] %s4521_s22  ;;  %s352_s26 = sshll.u32 %s4531_s25, 4  ;;  %s4651_s26 = int_to_ptr.vmem [resolvable:$true] %s352_s26 }
  0x17   : > { %5482 = sst [smem:[#allocation30_spill]] %s4525_s23  ;;  %s4646_s27 = sadd.s32 4294967295, %s4529_s24  }
  0x18   : > { %5483 = sst [smem:[#allocation31_spill]] %s4646_s27  ;;  %p3330_p0 = scmp.ge.s32.totalorder %s4529_s24, 1 }
  0x19   : > { %p5449_p1 = scmp.eq.s32.totalorder %s4646_s27, 0  ;;  %p340_p2 = scmp.lt.s32.totalorder %s4529_s24, 3 }
  0x1a   : > { %s4532_s29 = smov [#allocation11]   ;;  %s4533_s14 = smov [#allocation14]  }
  0x1b   : > { %p4653_p3 = pnand %p3330_p0, %p340_p2  ;;  %s365_s30 = sshll.u32 %s4532_s29, 4  ;;  %s4666_s30 = int_to_ptr.vmem [resolvable:$true] %s365_s30 }
  0x1c   : > { %s391_s15 = sshll.u32 %s4533_s14, 4  ;;  %s5487_s4 = sld [smem:[#allocation39_spill]]  ;;  %s4668_s15 = int_to_ptr.vmem [resolvable:$true] %s391_s15 }
  0x1d   : > { %s5484_s28 = scalar_select %p4653_p3, 1, 0 }
  0x1e   : > { %p3857_p5 = pneg %p4653_p3 }
  0x1f   : > { %5485 = sst [smem:[#allocation32_spill]] %s5484_s28 }
  0x20   : > { %p4662_p6 = pnand %p3857_p5, %p5449_p1 }
  0x22   : > { %s5486_s13 = scalar_select %p4662_p6, 1, 0 }
  0x23   : > { %s4151_s18 = scalar_lea.hbm %s5487_s4, 1024  ;;  %p4678_p8 = pneg %p4662_p6 }
  0x24   : > { %p4152_p7 = scmp.ne.s32.totalorder %s5487_s4, %s4151_s18  ;;  %p4158_p11 = scmp.lt.u32.totalorder %s4151_s18, %s5487_s4 }
  0x25   : > { %s5488_s25 = scalar_select %p4678_p8, 1, 0 }
  0x26   : > { %p4154_p9 = pnand %p4678_p8, %p4152_p7 }
  0x28   : > { %p4155_p10 = pneg %p4154_p9 }
  0x2a   : > { %p4160_p12 = pnand %p4158_p11, %p4155_p10 }
  0x2c   : > { %4163 = shalt.err (!%p4160_p12)
}
  0x2d   : > { %s4164_s16 = scalar_lea.vmem %s4651_s26, 1024  ;;  %p4172_p5 = scmp.lt.s32.totalorder %s4651_s26, %s4651_s26 }
  0x2e   : > { %p4165_p13 = scmp.ne.s32.totalorder %s4651_s26, %s4164_s16  ;;  %p4173_p4 = scmp.lt.s32.totalorder %s4164_s16, %s4164_s16 }
  0x30   : > { %p4167_p0 = pnand %p4165_p13, %p4678_p8  ;;  %p4174_p7 = por %p4173_p4, %p4172_p5 }
  0x32   : > { %p4168_p2 = pneg %p4167_p0 }
  0x34   : > { %p4175_p9 = pnand %p4174_p7, %p4168_p2 }
  0x36   : > { %4178 = shalt.err (!%p4175_p9)
}
  0x37   : > { %s5443_s17 = smov 64   ;;  %s5445_s18 = smov 4  }
  0x38   : > { %3860 = dma.hbm_to_vmem [thread:$0]  (!%p4662_p6), %s5487_s4, 1024, %s4651_s26, [#allocation9], %s5443_s17, %s5443_s17, %s5445_s18  }
  0x39   : > { %s5489_s5 = sld [smem:[#allocation40_spill]] }
  0x3f   : > { %s4179_s16 = scalar_lea.hbm %s5489_s5, 1024 }
  0x40   : > { %p4180_p4 = scmp.ne.s32.totalorder %s5489_s5, %s4179_s16  ;;  %p4186_p12 = scmp.lt.u32.totalorder %s4179_s16, %s5489_s5 }
  0x42   : > { %p4182_p10 = pnand %p4180_p4, %p4678_p8 }
  0x44   : > { %p4183_p11 = pneg %p4182_p10 }
  0x46   : > { %p4188_p13 = pnand %p4186_p12, %p4183_p11 }
  0x48   : > { %4191 = shalt.err (!%p4188_p13)
}
  0x49   : > { %s4192_s26 = scalar_lea.vmem %s4666_s30, 1024  ;;  %p4200_p7 = scmp.lt.s32.totalorder %s4666_s30, %s4666_s30 }
  0x4a   : > { %p4193_p0 = scmp.ne.s32.totalorder %s4666_s30, %s4192_s26  ;;  %p4201_p9 = scmp.lt.s32.totalorder %s4192_s26, %s4192_s26 }
  0x4c   : > { %p4195_p2 = pnand %p4193_p0, %p4678_p8  ;;  %p4202_p4 = por %p4201_p9, %p4200_p7 }
  0x4e   : > { %p4196_p5 = pneg %p4195_p2 }
  0x50   : > { %p4203_p10 = pnand %p4202_p4, %p4196_p5 }
  0x52   : > { %4206 = shalt.err (!%p4203_p10)
}
  0x53   : > { %3863 = dma.hbm_to_vmem [thread:$0]  (!%p4662_p6), %s5489_s5, 1024, %s4666_s30, [#allocation12], %s5443_s17, %s5443_s17, %s5445_s18  }
  0x54   : > { %s5490_s7 = sld [smem:[#allocation42_spill]] }
  0x5a   : > { %s4207_s19 = scalar_lea.hbm %s5490_s7, 1024 }
  0x5b   : > { %p4208_p11 = scmp.ne.s32.totalorder %s5490_s7, %s4207_s19  ;;  %p4214_p0 = scmp.lt.u32.totalorder %s4207_s19, %s5490_s7 }
  0x5d   : > { %p4210_p12 = pnand %p4208_p11, %p4678_p8 }
  0x5f   : > { %p4211_p13 = pneg %p4210_p12 }
  0x61   : > { %p4216_p2 = pnand %p4214_p0, %p4211_p13 }
  0x63   : > { %4219 = shalt.err (!%p4216_p2)
}
  0x64   : > { %s4220_s30 = scalar_lea.vmem %s4668_s15, 1024  ;;  %p4228_p4 = scmp.lt.s32.totalorder %s4668_s15, %s4668_s15 }
  0x65   : > { %p4221_p5 = scmp.ne.s32.totalorder %s4668_s15, %s4220_s30  ;;  %p4229_p10 = scmp.lt.s32.totalorder %s4220_s30, %s4220_s30 }
  0x67   : > { %p4223_p7 = pnand %p4221_p5, %p4678_p8  ;;  %p4230_p11 = por %p4229_p10, %p4228_p4 }
  0x69   : > { %p4224_p9 = pneg %p4223_p7 }
  0x6b   : > { %p4231_p12 = pnand %p4230_p11, %p4224_p9 }
  0x6d   : > { %4234 = shalt.err (!%p4231_p12)
}
  0x6e   : > { %3869 = dma.hbm_to_vmem [thread:$0]  (!%p4662_p6), %s5490_s7, 1024, %s4668_s15, [#allocation15], %s5443_s17, %s5443_s17, %s5445_s18  }
  0x6f   : > { %s3329_s11 = sadd.s32 4294967294, %s4529_s24   ;;  %s4756_s12 = sadd.s32 1, %s4529_s24  }
  0x70   : > { %5491 = sst [smem:[#allocation33_spill]] %s4756_s12  ;;  %s44_s28 = sadd.s32 1, %s4525_s23 }
  0x71   : > { %s41_s19 = ssub.s32 %s4529_s24, %s4756_s12  ;;  %p51_p13 = scmp.ne.s32.totalorder %s4525_s23, %s4521_s22 }
  0x72   : > { %p42_p0 = scmp.eq.s32.totalorder %s41_s19, 0  ;;  %p52_p2 = scmp.eq.s32.totalorder %s4529_s24, 0 }
  0x73   : > { %p57_p5 = scmp.ne.s32.totalorder %s4521_s22, %s4517_s21  ;;  %p327_p7 = scmp.eq.s32.totalorder %s4646_s27, 1 }
  0x74   : > { %s4768_s20 = scalar_select %p42_p0, %s4525_s23, %s44_s28  }
  0x75   : > { %p53_p9 = por %p52_p2, %p51_p13  ;;  %p4772_p4 = por %p5449_p1, %p57_p5 }
  0x76   : > { %5492 = sst [smem:[#allocation34_spill]] %s4768_s20  ;;  %p4776_p10 = por %p327_p7, %p51_p13 }
  0x77   : > { %s5493_s15 = scalar_select %p4772_p4, 1, 0 }
  0x78   : > { %s5495_s29 = scalar_select %p4776_p10, 1, 0 }
  0x79   : > { %5494 = sst [smem:[#allocation35_spill]] %s5493_s15  ;;  %p333_p11 = scmp.eq.s32.totalorder %s3329_s11, 1 }
  0x7a   : > { %5496 = sst [smem:[#allocation36_spill]] %s5495_s29  ;;  %p3899_p12 = scmp.lt.s32.totalorder %s4529_s24, 2 }
  0x7b   : > { %s4782_s14 = sand.u32 1, %s4525_s23   ;;  %p4784_p3 = por %p333_p11, %p57_p5 }
  0x7c   : > { %p4789_p0 = pnand %p3899_p12, %p53_p9  ;;  %s5448_s10 = sshll.u32 %s4782_s14, 3 }
  0x7d   : > { %s5497_s16 = scalar_select %p4784_p3, 1, 0 }
  0x7e   : > { %s5499_s26 = scalar_select %p4789_p0, 1, 0 }
  0x7f   : > { %5498 = sst [smem:[#allocation37_spill]] %s5497_s16  ;;  %s5447_s28 = sshll.u32 %s4529_s24, 7 }
  0x80   : > { %s5500_s1 = sld [smem:[#allocation38_spill]]  ;;  %s462_s18 = scalar_lea.vmem [#allocation5], %s5448_s10 }
  0x81   : > { %s469_s30 = sshll.u32 %s462_s18, 4  ;;  %s5501_s4 = sand.u32 1, %s4529_s24   ;;  %s4804_s30 = int_to_ptr.vmem [resolvable:$true] %s469_s30 }
  0x82   : > { %s4808_s5 = scalar_lea.sflag [#allocation6], %s5501_s4  ;;  %p4814_p2 = pneg %p4789_p0 }
  0x84   : > { %s5502_s20 = scalar_select %p4814_p2, 1, 0 }
  0x86   : > { %s4800_s17 = scalar_lea.hbm %s5500_s1, %s5447_s28  ;;  %s4240_s18 = scalar_lea.hbm %s5500_s1, 256 }
  0x87   : > { %s4235_s7 = scalar_lea.hbm %s4800_s17, 128  ;;  %p4241_p9 = scmp.lt.u32.totalorder %s4800_s17, %s5500_s1 }
  0x88   : > { %p4236_p13 = scmp.ne.s32.totalorder %s4800_s17, %s4235_s7  ;;  %p4242_p11 = scmp.lt.u32.totalorder %s4240_s18, %s4235_s7 }
  0x89   : > { %p4244_p1 = scmp.lt.u32.totalorder %s4235_s7, %s4800_s17 }
  0x8a   : > { %p4238_p5 = pnand %p4814_p2, %p4236_p13  ;;  %p4243_p12 = por %p4242_p11, %p4241_p9 }
  0x8c   : > { %p4239_p7 = pneg %p4238_p5  ;;  %p4245_p3 = por %p4244_p1, %p4243_p12 }
  0x8e   : > { %p4246_p10 = pnand %p4245_p3, %p4239_p7 }
  0x90   : > { %4249 = shalt.err (!%p4246_p10)
}
  0x91   : > { %s4250_s4 = scalar_lea.vmem %s4804_s30, 128  ;;  %s4536_s19 = smov [#allocation5]  }
  0x92   : > { %p4251_p13 = scmp.ne.s32.totalorder %s4804_s30, %s4250_s4  ;;  %s4255_s11 = sshll.u32 %s4536_s19, 4  ;;  %s4256_s11 = int_to_ptr.vmem [resolvable:$false] %s4255_s11 }
  0x93   : > { %s4257_s10 = scalar_lea.vmem %s4256_s11, 256  ;;  %p4258_p6 = scmp.lt.s32.totalorder %s4804_s30, %s4256_s11 }
  0x94   : > { %p4253_p5 = pnand %p4251_p13, %p4814_p2  ;;  %p4259_p8 = scmp.lt.s32.totalorder %s4257_s10, %s4250_s4 }
  0x96   : > { %p4254_p4 = pneg %p4253_p5  ;;  %p4260_p9 = por %p4259_p8, %p4258_p6 }
  0x98   : > { %p4261_p11 = pnand %p4260_p9, %p4254_p4 }
  0x9a   : > { %4264 = shalt.err (!%p4261_p11)
}
  0x9b   : > { %s5503_s7 = smov 4   ;;  %s5504_s28 = smov 64  }
  0x9c   : > { %3882 = dma.hbm_to_vmem [thread:$0]  (!%p4789_p0), %s4800_s17, 128, %s4804_s30, %s4808_s5, %s5504_s28, %s5504_s28, %s5503_s7  }
  0x9d   : > { %s5505_s18 = sshll.u32 %s4782_s14, 3  ;;  %s5506_s11 = sshll.u32 %s4529_s24, 7 }
  0x9e   : > { %s483_s19 = scalar_lea.vmem [#allocation7], %s5505_s18  ;;  %s4848_s23 = scalar_lea.hbm %s5428_s2, %s5506_s11 }
  0x9f   : > { %s490_s1 = sshll.u32 %s483_s19, 4  ;;  %s4537_s12 = smov [#allocation13]   ;;  %s4850_s1 = int_to_ptr.vmem [resolvable:$true] %s490_s1 }
  0xa0   : > { %s378_s16 = sshll.u32 %s4537_s12, 4  ;;  %s4538_s21 = smov [#allocation16]   ;;  %s379_s16 = int_to_ptr.vmem [resolvable:$true] %s378_s16 }
  0xa1   : > { %s404_s29 = sshll.u32 %s4538_s21, 4  ;;  %s5507_s6 = sld [smem:[#allocation41_spill]]  ;;  %s4852_s29 = int_to_ptr.vmem [resolvable:$true] %s404_s29 }
  0xa2   : > { %p5508_p3 = scmp.ne.s32.totalorder %s5488_s25, 0 }
  0xa7   : > { %s4265_s30 = scalar_lea.hbm %s5507_s6, 1024 }
  0xa8   : > { %p4266_p1 = scmp.ne.s32.totalorder %s5507_s6, %s4265_s30  ;;  %p4272_p4 = scmp.lt.u32.totalorder %s4265_s30, %s5507_s6 }
  0xaa   : > { %p4268_p6 = pnand %p4266_p1, %p5508_p3 }
  0xac   : > { %p4269_p8 = pneg %p4268_p6 }
  0xae   : > { %p4274_p10 = pnand %p4272_p4, %p4269_p8 }
  0xb0   : > { %4277 = shalt.err (!%p4274_p10)
}
  0xb1   : > { %s4278_s21 = scalar_lea.vmem %s379_s16, 1024  ;;  %p4286_p5 = scmp.lt.s32.totalorder %s379_s16, %s379_s16 }
  0xb2   : > { %p4279_p7 = scmp.ne.s32.totalorder %s379_s16, %s4278_s21  ;;  %p4287_p9 = scmp.lt.s32.totalorder %s4278_s21, %s4278_s21 }
  0xb4   : > { %p4281_p12 = pnand %p4279_p7, %p5508_p3  ;;  %p4288_p11 = por %p4287_p9, %p4286_p5 }
  0xb6   : > { %p4282_p13 = pneg %p4281_p12 }
  0xb8   : > { %p4289_p0 = pnand %p4288_p11, %p4282_p13 }
  0xba   : > { %4292 = shalt.err (!%p4289_p0)
}
  0xbb   : > { %p5509_p1 = scmp.ne.s32.totalorder %s5486_s13, 0  ;;  %s4293_s30 = scalar_lea.hbm %s5434_s8, 4096 }
  0xbc   : > { %p4294_p6 = scmp.ne.s32.totalorder %s5434_s8, %s4293_s30  ;;  %p4300_p4 = scmp.lt.u32.totalorder %s4293_s30, %s5434_s8 }
  0xbd   : > { %3866 = dma.hbm_to_vmem [thread:$0]  (!%p5509_p1), %s5507_s6, 1024, %s379_s16, [#allocation12], %s5504_s28, %s5504_s28, %s5503_s7  }
  0xbe   : > { %p4296_p0 = pnand %p4294_p6, %p5508_p3 }
  0xc0   : > { %p4297_p8 = pneg %p4296_p0 }
  0xc2   : > { %p4302_p10 = pnand %p4300_p4, %p4297_p8 }
  0xc4   : > { %4305 = shalt.err (!%p4302_p10)
}
  0xc5   : > { %s4306_s16 = scalar_lea.vmem %s4852_s29, 4096  ;;  %p4314_p5 = scmp.lt.s32.totalorder %s4852_s29, %s4852_s29 }
  0xc6   : > { %p4307_p7 = scmp.ne.s32.totalorder %s4852_s29, %s4306_s16  ;;  %p4315_p9 = scmp.lt.s32.totalorder %s4306_s16, %s4306_s16 }
  0xc8   : > { %p4309_p12 = pnand %p4307_p7, %p5508_p3  ;;  %p4316_p11 = por %p4315_p9, %p4314_p5 }
  0xca   : > { %p4310_p13 = pneg %p4309_p12 }
  0xcc   : > { %p4317_p6 = pnand %p4316_p11, %p4310_p13 }
  0xce   : > { %4320 = shalt.err (!%p4317_p6)
}
  0xcf   : > { %s4539_s21 = smov 256   ;;  %s4540_s27 = smov 16  }
  0xd0   : > { %3872 = dma.hbm_to_vmem [thread:$0]  (!%p5509_p1), %s5434_s8, 4096, %s4852_s29, [#allocation15], %s4539_s21, %s4539_s21, %s4540_s27  }
  0xd1   : > { %s4541_s17 = smov [#allocation17]   ;;  %s3338_s18 = sshll.u32 %s4782_s14, 4 }
  0xd2   : > { %s417_s30 = sshll.u32 %s4541_s17, 4  ;;  %s4321_s4 = scalar_lea.hbm %s5435_s9, 4096  ;;  %s418_s30 = int_to_ptr.vmem [resolvable:$true] %s417_s30 }
  0xd3   : > { %p4322_p0 = scmp.ne.s32.totalorder %s5435_s9, %s4321_s4  ;;  %p4328_p10 = scmp.lt.u32.totalorder %s4321_s4, %s5435_s9 }
  0xd5   : > { %p4324_p8 = pnand %p4322_p0, %p5508_p3 }
  0xd7   : > { %p4325_p4 = pneg %p4324_p8 }
  0xd9   : > { %p4330_p7 = pnand %p4328_p10, %p4325_p4 }
  0xdb   : > { %4333 = shalt.err (!%p4330_p7)
}
  0xdc   : > { %s4334_s29 = scalar_lea.vmem %s418_s30, 4096  ;;  %p4342_p9 = scmp.lt.s32.totalorder %s418_s30, %s418_s30 }
  0xdd   : > { %p4335_p12 = scmp.ne.s32.totalorder %s418_s30, %s4334_s29  ;;  %p4343_p11 = scmp.lt.s32.totalorder %s4334_s29, %s4334_s29 }
  0xdf   : > { %p4337_p13 = pnand %p4335_p12, %p5508_p3  ;;  %p4344_p6 = por %p4343_p11, %p4342_p9 }
  0xe1   : > { %p4338_p5 = pneg %p4337_p13 }
  0xe3   : > { %p4345_p2 = pnand %p4344_p6, %p4338_p5 }
  0xe5   : > { %4348 = shalt.err (!%p4345_p2)
}
  0xe6   : > { %3875 = dma.hbm_to_vmem [thread:$0]  (!%p5509_p1), %s5435_s9, 4096, %s418_s30, [#allocation18], %s5504_s28, %s5504_s28, %s5503_s7  }
  0xe7   : > { %s3495_s25 = sshll.u32 %s4529_s24, 8  ;;  %s441_s15 = scalar_lea.vmem [#allocation2], %s3338_s18 }
  0xe8   : > { %s448_s21 = sshll.u32 %s441_s15, 4  ;;  %s4928_s13 = scalar_lea.hbm %s5426_s0, %s3495_s25  ;;  %s4930_s21 = int_to_ptr.vmem [resolvable:$true] %s448_s21 }
  0xe9   : > { %s438_s10 = scalar_lea.sflag [#allocation3], %s4782_s14  ;;  %s4349_s17 = scalar_lea.hbm %s4928_s13, 256 }
  0xea   : > { %p4350_p2 = scmp.ne.s32.totalorder %s4928_s13, %s4349_s17  ;;  %p5510_p3 = scmp.ne.s32.totalorder %s5502_s20, 0 }
  0xeb   : > { %s4354_s11 = scalar_lea.hbm %s5426_s0, 512  ;;  %p4355_p8 = scmp.lt.u32.totalorder %s4928_s13, %s5426_s0 }
  0xec   : > { %p4352_p1 = pnand %p4350_p2, %p5510_p3  ;;  %p4356_p4 = scmp.lt.u32.totalorder %s4354_s11, %s4349_s17 }
  0xed   : > { %p4358_p7 = scmp.lt.u32.totalorder %s4349_s17, %s4928_s13 }
  0xee   : > { %p4353_p0 = pneg %p4352_p1  ;;  %p4357_p10 = por %p4356_p4, %p4355_p8 }
  0xf0   : > { %p4359_p12 = por %p4358_p7, %p4357_p10 }
  0xf2   : > { %p4360_p13 = pnand %p4359_p12, %p4353_p0 }
  0xf4   : > { %4363 = shalt.err (!%p4360_p13)
}
  0xf5   : > { %s4364_s29 = scalar_lea.vmem %s4930_s21, 256  ;;  %s4542_s6 = smov [#allocation2]  }
  0xf6   : > { %p4365_p5 = scmp.ne.s32.totalorder %s4930_s21, %s4364_s29  ;;  %s4369_s22 = sshll.u32 %s4542_s6, 4  ;;  %s4370_s22 = int_to_ptr.vmem [resolvable:$false] %s4369_s22 }
  0xf7   : > { %s4371_s15 = scalar_lea.vmem %s4370_s22, 512  ;;  %p4372_p6 = scmp.lt.s32.totalorder %s4930_s21, %s4370_s22 }
  0xf8   : > { %p4367_p9 = pnand %p4365_p5, %p5510_p3  ;;  %p4373_p2 = scmp.lt.s32.totalorder %s4371_s15, %s4364_s29 }
  0xfa   : > { %p4368_p11 = pneg %p4367_p9  ;;  %p4374_p1 = por %p4373_p2, %p4372_p6 }
  0xfc   : > { %p4375_p8 = pnand %p4374_p1, %p4368_p11 }
  0xfe   : > { %4378 = shalt.err (!%p4375_p8)
}
  0xff   : > { %s4543_s27 = smov 128   ;;  %s4544_s12 = smov 8  }
 0x100   : > { %p5511_p0 = scmp.ne.s32.totalorder %s5499_s26, 0  ;;  %s4964_s19 = scalar_lea.hbm %s5429_s3, %s3495_s25 }
 0x101   : > { %s504_s11 = scalar_lea.vmem [#allocation8], %s3338_s18  ;;  %s4379_s16 = scalar_lea.hbm %s4848_s23, 128 }
 0x102   : > { %3879 = dma.hbm_to_vmem [thread:$0]  (!%p5511_p0), %s4928_s13, 256, %s4930_s21, %s438_s10, %s4543_s27, %s4543_s27, %s4544_s12  }
 0x103   : > { %s511_s4 = sshll.u32 %s504_s11, 4  ;;  %p4380_p4 = scmp.ne.s32.totalorder %s4848_s23, %s4379_s16  ;;  %s4968_s4 = int_to_ptr.vmem [resolvable:$true] %s511_s4 }
 0x104   : > { %s4384_s21 = scalar_lea.hbm %s5428_s2, 256  ;;  %p4385_p12 = scmp.lt.u32.totalorder %s4848_s23, %s5428_s2 }
 0x105   : > { %p4382_p10 = pnand %p4380_p4, %p5510_p3  ;;  %p4386_p13 = scmp.lt.u32.totalorder %s4384_s21, %s4379_s16 }
 0x106   : > { %p4388_p9 = scmp.lt.u32.totalorder %s4379_s16, %s4848_s23 }
 0x107   : > { %p4383_p7 = pneg %p4382_p10  ;;  %p4387_p5 = por %p4386_p13, %p4385_p12 }
 0x109   : > { %p4389_p11 = por %p4388_p9, %p4387_p5 }
 0x10b   : > { %p4390_p6 = pnand %p4389_p11, %p4383_p7 }
 0x10d   : > { %4393 = shalt.err (!%p4390_p6)
}
 0x10e   : > { %s4394_s14 = scalar_lea.vmem %s4850_s1, 128  ;;  %s4545_s18 = smov [#allocation7]  }
 0x10f   : > { %p4395_p2 = scmp.ne.s32.totalorder %s4850_s1, %s4394_s14  ;;  %s4399_s25 = sshll.u32 %s4545_s18, 4  ;;  %s4400_s25 = int_to_ptr.vmem [resolvable:$false] %s4399_s25 }
 0x110   : > { %s4401_s22 = scalar_lea.vmem %s4400_s25, 256  ;;  %p4402_p4 = scmp.lt.s32.totalorder %s4850_s1, %s4400_s25 }
 0x111   : > { %p4397_p1 = pnand %p4395_p2, %p5510_p3  ;;  %p4403_p10 = scmp.lt.s32.totalorder %s4401_s22, %s4394_s14 }
 0x113   : > { %p4398_p8 = pneg %p4397_p1  ;;  %p4404_p12 = por %p4403_p10, %p4402_p4 }
 0x115   : > { %p4405_p13 = pnand %p4404_p12, %p4398_p8 }
 0x117   : > { %4408 = shalt.err (!%p4405_p13)
}
 0x118   : > { %3885 = dma.hbm_to_vmem [thread:$0]  (!%p5511_p0), %s4848_s23, 128, %s4850_s1, %s4808_s5, %s5504_s28, %s5504_s28, %s5503_s7  }
 0x119   : > { %s5512_s15 = sand.u32 1, %s4529_s24   ;;  %s4409_s30 = scalar_lea.hbm %s4964_s19, 256 }
 0x11a   : > { %s4997_s17 = scalar_lea.sflag [#allocation9], %s5512_s15  ;;  %p4410_p7 = scmp.ne.s32.totalorder %s4964_s19, %s4409_s30 }
 0x11b   : > { %s4414_s29 = scalar_lea.hbm %s5429_s3, 512  ;;  %p4415_p11 = scmp.lt.u32.totalorder %s4964_s19, %s5429_s3 }
 0x11c   : > { %p4412_p5 = pnand %p4410_p7, %p5510_p3  ;;  %p4416_p6 = scmp.lt.u32.totalorder %s4414_s29, %s4409_s30 }
 0x11d   : > { %p4418_p1 = scmp.lt.u32.totalorder %s4409_s30, %s4964_s19 }
 0x11e   : > { %p4413_p9 = pneg %p4412_p5  ;;  %p4417_p2 = por %p4416_p6, %p4415_p11 }
 0x120   : > { %p4419_p8 = por %p4418_p1, %p4417_p2 }
 0x122   : > { %p4420_p4 = pnand %p4419_p8, %p4413_p9 }
 0x124   : > { %4423 = shalt.err (!%p4420_p4)
}
 0x125   : > { %s4424_s1 = scalar_lea.vmem %s4968_s4, 256  ;;  %s4546_s5 = smov [#allocation8]  }
 0x126   : > { %p4425_p10 = scmp.ne.s32.totalorder %s4968_s4, %s4424_s1  ;;  %s4429_s23 = sshll.u32 %s4546_s5, 4  ;;  %s4430_s23 = int_to_ptr.vmem [resolvable:$false] %s4429_s23 }
 0x127   : > { %s4431_s7 = scalar_lea.vmem %s4430_s23, 512  ;;  %p4432_p7 = scmp.lt.s32.totalorder %s4968_s4, %s4430_s23 }
 0x128   : > { %p4427_p12 = pnand %p4425_p10, %p5510_p3  ;;  %p4433_p5 = scmp.lt.s32.totalorder %s4431_s7, %s4424_s1 }
 0x12a   : > { %p4428_p13 = pneg %p4427_p12  ;;  %p4434_p11 = por %p4433_p5, %p4432_p7 }
 0x12c   : > { %p4435_p6 = pnand %p4434_p11, %p4428_p13 }
 0x12e   : > { %4438 = shalt.err (!%p4435_p6)
}
 0x12f   : > { %3888 = dma.hbm_to_vmem [thread:$0]  (!%p5511_p0), %s4964_s19, 256, %s4968_s4, %s4997_s17, %s4543_s27, %s4543_s27, %s4544_s12  }
 0x130   : > { %s5513_s20 = sld [smem:[#allocation32_spill]] }
 0x136   : > { %p5514_p3 = scmp.ne.s32.totalorder %s5513_s20, 0 }
 0x137   : > { %s5515_s28 = sld [smem:[#allocation29_spill]] (!%p5514_p3)  ;;  %s5516_s13 = sld [smem:[#allocation35_spill]] (!%p5514_p3) }
 0x138   : > { %523 = sbr.rel (%p5514_p3) target bundleno = 6663 (0x1a07), region = 68 }
 0x13d   : > { %s5027_s10 = sand.u32 (!%p5514_p3), 1, %s5515_s28   ;;  %p5517_p9 = scmp.ne.s32.totalorder (!%p5514_p3), %s5516_s13, 0 }
 0x13e   : > { %s5030_s14 = sshll.u32 (!%p5514_p3), %s5027_s10, 4  ;;  %s526_s26 = scalar_lea.sflag (!%p5514_p3), [#allocation3], %s5027_s10 }
 0x13f   : > { %s5034_s18 = scalar_lea.vmem [#allocation2], %s5030_s14 }
 0x140   : > { %4484 = dma.done.wait (%p5517_p9), %s526_s26, 256  }
 0x141   : > { %4486 = vsyncadd (%p5517_p9), %s526_s26, 4294967040  ;;  %s5518_s27 = sld [smem:[#allocation31_spill]]  ;;  %s3352_s19 = sshll.u32 %s5027_s10, 3 }
 0x142   : > { %s5042_s25 = scalar_lea.vmem [#allocation5], %s3352_s19 }
 0x147   : > { %s534_s12 = sand.u32 1, %s5518_s27  }
 0x148   : > { %s535_s4 = scalar_lea.sflag [#allocation6], %s534_s12 }
 0x149   : > { %4488 = dma.done.wait (%p5517_p9), %s535_s4, 256  }
 0x14a   : > { %4490 = vsyncadd (%p5517_p9), %s535_s4, 4294967040  ;;  %s5048_s22 = scalar_lea.vmem [#allocation7], %s3352_s19  ;;  %s553_s15 = scalar_lea.sflag [#allocation9], %s534_s12 }
 0x14b   : > { %s556_s17 = scalar_lea.vmem [#allocation8], %s5030_s14 }
 0x14c   : > { %4492 = dma.done.wait (%p5517_p9), %s553_s15, 256  }
 0x14d   : > { %4494 = vsyncadd (%p5517_p9), %s553_s15, 4294967040  ;;  %p5519_p0 = scmp.eq.s32.totalorder %s5518_s27, 0 }
 0x14f   : > { %4496 = dma.done.wait (%p5519_p0), [#allocation9], 1024   ;;  %p5520_p2 = pmov %p5519_p0 }
 0x150   : > { %p5521_p1 = pmov %p5519_p0 }
 0x151   : > { %4498 = vsyncadd (%p5520_p2), [#allocation9], 4294966272 }
 0x152   : > { %4500 = dma.done.wait (%p5521_p1), [#allocation12], 2048   ;;  %p5522_p8 = pmov %p5519_p0 }
 0x153   : > { %p5523_p4 = pmov %p5519_p0 }
 0x154   : > { %4502 = vsyncadd (%p5522_p8), [#allocation12], 4294965248 }
 0x155   : > { %4504 = dma.done.wait (%p5523_p4), [#allocation15], 5120   ;;  %p5524_p10 = pmov %p5519_p0 }
 0x156   : > { %p5525_p12 = pmov %p5519_p0 }
 0x157   : > { %4506 = vsyncadd (%p5524_p10), [#allocation15], 4294962176 }
 0x158   : > { %4508 = dma.done.wait (%p5525_p12), [#allocation18], 4096   ;;  %p5526_p13 = pmov %p5519_p0 }
 0x159   : > { %v4547_v0 = vmov 0.0   ;;  %vm4548_vm0 = vmmov 0   ;;  %v3963_v1 = vld [vmem:[#allocation11] sm:$0xff]   ;;  %v3964_v2 = vld [vmem:[#allocation11 + $0x8] sm:$0xff]   ;;  %v3966_v5 = vld [vmem:[#allocation11 + $0x10] sm:$0xff]   ;;  %vm976_vm1 = vcmask 130048  }
 0x15a   : > { %4510 = vsyncadd (%p5526_p13), [#allocation18], 4294963200  ;;  %3639 = vmatprep.subr.bf16.mxu1 %v4547_v0  ;;  %3619 = vmatprep.subr.bf16.mxu0 %v4547_v0  ;;  %v3965_v3 = vld [vmem:[#allocation10] sm:$0xff]   ;;  %v3967_v4 = vld [vmem:[#allocation10 + $0x8] sm:$0xff]   ;;  %s4549_s30 = smov 112   ;;  %s4550_s11 = smov 96  }
 0x15b   : > { %3655 = vmatprep.mubr.msk.bf16.mxu1 %vm4548_vm0, %v4547_v0  ;;  %3635 = vmatprep.mubr.msk.bf16.mxu0 %vm4548_vm0, %v4547_v0  ;;  %v3969_v6 = vld [vmem:[#allocation10 + $0x10] sm:$0xff]   ;;  %v3968_v7 = vld [vmem:[#allocation11 + $0x18] sm:$0xff]   ;;  %v3970_v9 = vld [vmem:[#allocation11 + $0x20] sm:$0xff]   ;;  %s4551_s16 = smov 80   ;;  %s4552_s29 = smov 64  }
 0x15c   : > { %3640 = vmatpush3.bf16.msra.mxu1 %v3963_v1  ;;  %3620 = vmatpush3.bf16.msra.mxu0 %v3965_v3  ;;  %v3971_v8 = vld [vmem:[#allocation10 + $0x18] sm:$0xff]   ;;  %v3973_v10 = vld [vmem:[#allocation10 + $0x20] sm:$0xff]   ;;  %v3972_v11 = vld [vmem:[#allocation11 + $0x28] sm:$0xff]   ;;  %s4553_s6 = smov 48   ;;  %s4554_s21 = smov 32  }
 0x15d   : > { %3641 = vmatprep.subr.bf16.mxu1 %v4547_v0  ;;  %3621 = vmatprep.subr.bf16.mxu0 %v4547_v0  ;;  %v3975_v12 = vld [vmem:[#allocation10 + $0x28] sm:$0xff]   ;;  %v3974_v13 = vld [vmem:[#allocation11 + $0x30] sm:$0xff]   ;;  %v3976_v15 = vld [vmem:[#allocation11 + $0x38] sm:$0xff]   ;;  %s4555_s1 = smov 16   ;;  %s5527_s7 = sld [smem:[#allocation43_spill]] }
 0x15e   : > { %v3977_v14 = vld [vmem:[#allocation10 + $0x30] sm:$0xff]   ;;  %v3979_v16 = vld [vmem:[#allocation10 + $0x38] sm:$0xff]   ;;  %v3978_v19 = vld [vmem:[%s5042_s25] sm:$0xff]   ;;  %s5528_s19 = sld [smem:[#allocation44_spill]]  ;;  %s5530_s5 = sld [smem:[#allocation45_spill]] }
 0x15f   : > { %v637_v17 = vld [vmem:[%s5034_s18] sm:$0xff]  ;;  %v638_v18 = vld [vmem:[%s5034_s18 + $0x8] sm:$0xff]  ;;  %s3120_s20 = scalar_lea.sflag [#allocation4], %s5027_s10 }
 0x160   : > { %3642 = vmatpush3.bf16.msra.mxu1 %v3964_v2  ;;  %3622 = vmatpush3.bf16.msra.mxu0 %v3967_v4  ;;  %v639_v20 = vpack.c.bf16 %v638_v18, %v637_v17  ;;  %v3980_v32 = vld [vmem:[#allocation13] sm:$0xff]   ;;  %v3981_v33 = vld [vmem:[#allocation13 + $0x8] sm:$0xff]   ;;  %v3982_v34 = vld [vmem:[#allocation13 + $0x10] sm:$0xff]  }
 0x161   : > { %3643 = vmatprep.subr.bf16.mxu1 %v4547_v0  ;;  %3623 = vmatprep.subr.bf16.mxu0 %v4547_v0  ;;  %v3983_v35 = vld [vmem:[#allocation13 + $0x18] sm:$0xff]   ;;  %v3984_v36 = vld [vmem:[#allocation13 + $0x20] sm:$0xff]   ;;  %v3985_v37 = vld [vmem:[#allocation13 + $0x28] sm:$0xff]  }
 0x162   : > { %v3986_v38 = vld [vmem:[#allocation13 + $0x30] sm:$0xff]   ;;  %v3987_v39 = vld [vmem:[#allocation13 + $0x38] sm:$0xff]  }
 0x163   : > { %v3988_v40 = vld [vmem:[%s5048_s22] sm:$0xff]   ;;  %v5124_v41 = vld [vmem:[%s556_s17] sm:$0xff] }
 0x164   : > { %3644 = vmatpush3.bf16.msra.mxu1 %v3966_v5  ;;  %3624 = vmatpush3.bf16.msra.mxu0 %v3969_v6  ;;  %v5128_v43 = vld [vmem:[%s556_s17 + $0x8] sm:$0xff] }
 0x165   : > { %3645 = vmatprep.subr.bf16.mxu1 %v4547_v0  ;;  %3625 = vmatprep.subr.bf16.mxu0 %v4547_v0 }
 0x168   : > { %3646 = vmatpush3.bf16.msra.mxu1 %v3968_v7  ;;  %3626 = vmatpush3.bf16.msra.mxu0 %v3971_v8 }
 0x169   : > { %3647 = vmatprep.subr.bf16.mxu1 %v4547_v0  ;;  %3627 = vmatprep.subr.bf16.mxu0 %v4547_v0 }
 0x16c   : > { %3648 = vmatpush3.bf16.msra.mxu1 %v3970_v9  ;;  %3628 = vmatpush3.bf16.msra.mxu0 %v3973_v10 }
 0x16d   : > { %3649 = vmatprep.subr.bf16.mxu1 %v4547_v0  ;;  %3629 = vmatprep.subr.bf16.mxu0 %v4547_v0 }
 0x170   : > { %3650 = vmatpush3.bf16.msra.mxu1 %v3972_v11  ;;  %3630 = vmatpush3.bf16.msra.mxu0 %v3975_v12 }
 0x171   : > { %3651 = vmatprep.subr.bf16.mxu1 %v4547_v0  ;;  %3631 = vmatprep.subr.bf16.mxu0 %v4547_v0 }
 0x174   : > { %3652 = vmatpush3.bf16.msra.mxu1 %v3974_v13  ;;  %3632 = vmatpush3.bf16.msra.mxu0 %v3977_v14 }
 0x175   : > { %3653 = vmatprep.subr.bf16.mxu1 %v4547_v0  ;;  %3633 = vmatprep.subr.bf16.mxu0 %v4547_v0 }
 0x178   : > { %3654 = vmatpush3.bf16.msra.mxu1 %v3976_v15  ;;  %3634 = vmatpush3.bf16.msra.mxu0 %v3979_v16 }
 0x179   : > { %3679 = vmatprep.subr.bf16.mxu1 %v4547_v0  ;;  %3659 = vmatprep.subr.bf16.mxu0 %v4547_v0 }
 0x17b   : > { %3656 = vmatmul.mubr.bf16.vlgmr.msra.gmra.mrb[0].mxu1 %v3978_v19  ;;  %3636 = vmatmul.mubr.bf16.vlgmr.msra.gmra.mrb[0].mxu0 %v639_v20 }
 0x17c   : > { %3681 = vmatprep.mubr.msk.bf16.mxu1 %vm4548_vm0, %v4547_v0  ;;  %3675 = vmatprep.mubr.msk.bf16.mxu0 %vm4548_vm0, %v4547_v0 }
 0x17d   : > { %3660 = vmatpush3.bf16.msra.mxu0 %v3980_v32 }
 0x17e   : > { %3661 = vmatprep.subr.bf16.mxu0 %v4547_v0 }
 0x181   : > { %3662 = vmatpush3.bf16.msra.mxu0 %v3981_v33 }
 0x182   : > { %3663 = vmatprep.subr.bf16.mxu0 %v4547_v0 }
 0x185   : > { %3664 = vmatpush3.bf16.msra.mxu0 %v3982_v34 }
 0x186   : > { %3665 = vmatprep.subr.bf16.mxu0 %v4547_v0 }
 0x189   : > { %3666 = vmatpush3.bf16.msra.mxu0 %v3983_v35 }
 0x18a   : > { %3667 = vmatprep.subr.bf16.mxu0 %v4547_v0 }
 0x18d   : > { %3668 = vmatpush3.bf16.msra.mxu0 %v3984_v36 }
 0x18e   : > { %3669 = vmatprep.subr.bf16.mxu0 %v4547_v0 }
 0x191   : > { %3670 = vmatpush3.bf16.msra.mxu0 %v3985_v37 }
 0x192   : > { %3671 = vmatprep.subr.bf16.mxu0 %v4547_v0 }
 0x195   : > { %3672 = vmatpush3.bf16.msra.mxu0 %v3986_v38  ;;  %v3990_v38 = vld [vmem:[#allocation14 + $0x8] sm:$0xff]  }
 0x196   : > { %3673 = vmatprep.subr.bf16.mxu0 %v4547_v0 }
 0x199   : > { %3674 = vmatpush3.bf16.msra.mxu0 %v3987_v39 }
 0x19a   : > { %3703 = vmatprep.subr.bf16.mxu0 %v4547_v0 }
 0x19c   : > { %3676 = vmatmul.mubr.bf16.vlgmr.msra.gmra.mrb[4].mxu0 %v3988_v40 }
 0x19d   : > { %3705 = vmatprep.mubr.msk.bf16.mxu0 %vm4548_vm0, %v4547_v0  ;;  %3704 = vmatpush3.bf16.msra.mxu0 %v3990_v38 }
 0x19e   : > { %3715 = vmatprep.subr.bf16.mxu0 %v4547_v0 }
 0x24e   : > { %v853_v21 = vpop.f32.mrb[0].mxu1  ;;  %v742_v24 = vpop.f32.mrb[0].mxu0 }
 0x24f   : > { %v3657_v22 = vpop.f32.mrb[1].mxu1  ;;  %v3637_v27 = vpop.f32.mrb[1].mxu0 }
 0x250   : > { %v856_v23 = vpop.f32.mrb[2].mxu1  ;;  %v745_v28 = vpop.f32.mrb[2].mxu0 }
 0x251   : > { %v5100_v25 = vpack.c.bf16 %v856_v23, %v853_v21  ;;  %v3658_v26 = vpop.f32.mrb[3].mxu1  ;;  %v5104_v30 = vpack.c.bf16 %v745_v28, %v742_v24  ;;  %v3638_v31 = vpop.f32.mrb[3].mxu0 }
 0x253   : > { %v981_v29 = vsel %vm976_vm1, %v5100_v25, 0 }
 0x254   : > { %3680 = vmatpush3.bf16.xpose.msra.mxu1 %v981_v29 }
 0x255   : > { %3685 = vmatprep.subr.bf16.mxu1 %v4547_v0 }
 0x25b   : > { %3682 = vmatmul.mubr.msk.bf16.vlgmr.msra.gmra.mrb[4].mxu1 %vm976_vm1, %v5104_v30 }
 0x25c   : > { %3687 = vmatprep.mubr.msk.bf16.mxu1 %vm4548_vm0, %v4547_v0 }
 0x26f   : > { %v964_v61 = vpop.f32.mrb[4].mxu0 }
 0x270   : > { %v3677_v62 = vpop.f32.mrb[5].mxu0 }
 0x271   : > { %v967_v63 = vpop.f32.mrb[6].mxu0 }
 0x272   : > { %v3678_v1 = vpop.f32.mrb[7].mxu0  ;;  %v5140_v2 = vpack.c.bf16 %v967_v63, %v964_v61 }
 0x274   : > { %3686 = vmatpush3.bf16.msra.mxu1 %v5140_v2 }
 0x275   : > { %3691 = vmatprep.subr.bf16.mxu1 %v4547_v0 }
 0x32e   : > { %v1017_v42 = vpop.f32.mrb[4].mxu1 }
 0x32f   : > { %v1018_v44 = vadd.f32 %v1017_v42, %v5124_v41  ;;  %v3683_v45 = vpop.f32.mrb[5].mxu1 }
 0x330   : > { %v1020_v46 = vpop.f32.mrb[6].mxu1 }
 0x331   : > { %v1021_v47 = vadd.f32 %v1020_v46, %v5128_v43  ;;  %v3684_v48 = vpop.f32.mrb[7].mxu1  ;;  %v1024_v49 = vsel %vm976_vm1, %v1018_v44, -inf }
 0x332   : > { %1025 = vmax.xlane.f32.xlu0 %v1024_v49  ;;  %v3989_v48 = vld [vmem:[#allocation14] sm:$0xff]  }
 0x333   : > { %v1027_v50 = vsel %vm976_vm1, %v1021_v47, -inf }
 0x336   : > { %1028 = vmax.xlane.f32.xlu0 %v1027_v50 }
 0x34c   : > { %1098 = vrot.lane.b32.xlu0 %v5100_v25, %s4549_s30 }
 0x3bf   : > { %v1026_v51 = vpop.xlane.xlu0 %1025 }
 0x3c0   : > { %v1030_v52 = vsub.f32 %v1018_v44, %v1026_v51 }
 0x3c2   : > { %v1032_v53 = vmul.f32 1.442695, %v1030_v52 }
 0x3c3   : > { %v1029_v54 = vpop.xlane.xlu0 %1028 }
 0x3c4   : > { %4077 = vpow2.f32 %v1032_v53  ;;  %v1031_v55 = vsub.f32 %v1021_v47, %v1029_v54 }
 0x3c6   : > { %v1034_v56 = vmul.f32 1.442695, %v1031_v55 }
 0x3c7   : > { %v1099_v9 = vpop.permute.xlu0 %1098 }
 0x3c8   : > { %4079 = vpow2.f32 %v1034_v56  ;;  %v1104_v11 = vsel %vm976_vm1, %v1099_v9, 0 }
 0x3ce   : > { %v4078_v57 = vpop.eup %4077 }
 0x3cf   : > { %v1036_v58 = vsel %vm976_vm1, %v4078_v57, 0.0 }
 0x3d0   : > { %1037 = vadd.xlane.f32.xlu1 %v1036_v58 }
 0x3d2   : > { %v4080_v59 = vpop.eup %4079 }
 0x3d3   : > { %v1039_v60 = vsel %vm976_vm1, %v4080_v59, 0.0 }
 0x3d4   : > { %1040 = vadd.xlane.f32.xlu1 %v1039_v60 }
 0x3e5   : > { %1095 = vrot.lane.b32.xlu1 %v5104_v30, %s4549_s30 }
 0x45d   : > { %v1038_v3 = vpop.xlane.xlu1 %1037 }
 0x45e   : > { %4081 = vrcp.f32 %v1038_v3 }
 0x461   : > { %v1041_v4 = vpop.xlane.xlu1 %1040 }
 0x462   : > { %4083 = vrcp.f32 %v1041_v4 }
 0x465   : > { %v1096_v12 = vpop.permute.xlu1 %1095 }
 0x468   : > { %v4082_v5 = vpop.eup %4081 }
 0x469   : > { %v1044_v7 = vmul.f32 %v4082_v5, %v4078_v57 }
 0x46c   : > { %v4084_v6 = vpop.eup %4083 }
 0x46d   : > { %v1045_v8 = vmul.f32 %v4084_v6, %v4080_v59 }
 0x46f   : > { %v1046_v10 = vpack.c.bf16 %v1045_v8, %v1044_v7 }
 0x471   : > { %3688 = vmatmul.mubr.msk.bf16.vlgmr.msra.gmra.mrb[8].mxu1 %vm976_vm1, %v1046_v10 }
 0x472   : > { %3692 = vmatpush3.bf16.xpose.msra.mxu1 %v1104_v11  ;;  %3693 = vmatprep.mubr.msk.bf16.mxu1 %vm4548_vm0, %v4547_v0 }
 0x473   : > { %3697 = vmatprep.subr.bf16.mxu1 %v4547_v0 }
 0x479   : > { %3694 = vmatmul.mubr.msk.bf16.vlgmr.msra.gmra.mrb[12].mxu1 %vm976_vm1, %v1096_v12 }
 0x47a   : > { %3699 = vmatprep.mubr.msk.bf16.mxu1 %vm4548_vm0, %v4547_v0 }
 0x544   : > { %v1084_v13 = vpop.f32.mrb[8].mxu1 }
 0x545   : > { %v3689_v14 = vpop.f32.mrb[9].mxu1 }
 0x546   : > { %v1087_v15 = vpop.f32.mrb[10].mxu1 }
 0x547   : > { %v1091_v16 = vpack.c.bf16 %v1087_v15, %v1084_v13  ;;  %v3690_v17 = vpop.f32.mrb[11].mxu1 }
 0x54c   : > { %v1140_v18 = vpop.f32.mrb[12].mxu1 }
 0x54d   : > { %v1141_v19 = vadd.f32 %v1140_v18, %v5124_v41  ;;  %v3695_v20 = vpop.f32.mrb[13].mxu1 }
 0x54e   : > { %v1143_v21 = vpop.f32.mrb[14].mxu1 }
 0x54f   : > { %v1144_v22 = vadd.f32 %v1143_v21, %v5128_v43  ;;  %v3696_v23 = vpop.f32.mrb[15].mxu1  ;;  %v1147_v24 = vsel %vm976_vm1, %v1141_v19, -inf }
 0x550   : > { %1148 = vmax.xlane.f32.xlu1 %v1147_v24 }
 0x551   : > { %v1150_v26 = vsel %vm976_vm1, %v1144_v22, -inf }
 0x552   : > { %1151 = vmax.xlane.f32.xlu0 %v1150_v26 }
 0x5dd   : > { %v1149_v27 = vpop.xlane.xlu1 %1148 }
 0x5de   : > { %v1153_v28 = vsub.f32 %v1141_v19, %v1149_v27 }
 0x5df   : > { %v1152_v29 = vpop.xlane.xlu0 %1151 }
 0x5e0   : > { %v1155_v31 = vmul.f32 1.442695, %v1153_v28  ;;  %v1154_v32 = vsub.f32 %v1144_v22, %v1152_v29 }
 0x5e2   : > { %4085 = vpow2.f32 %v1155_v31  ;;  %v1157_v33 = vmul.f32 1.442695, %v1154_v32 }
 0x5e4   : > { %4087 = vpow2.f32 %v1157_v33 }
 0x5ec   : > { %v4086_v34 = vpop.eup %4085 }
 0x5ed   : > { %v1159_v35 = vsel %vm976_vm1, %v4086_v34, 0.0 }
 0x5ee   : > { %v4088_v36 = vpop.eup %4087  ;;  %1160 = vadd.xlane.f32.xlu0 %v1159_v35 }
 0x5ef   : > { %v1162_v37 = vsel %vm976_vm1, %v4088_v36, 0.0 }
 0x5f0   : > { %1163 = vadd.xlane.f32.xlu1 %v1162_v37  ;;  %v3991_v37 = vld [vmem:[#allocation14 + $0x10] sm:$0xff]  }
 0x601   : > { %1323 = vrot.lane.b32.xlu1 %v5100_v25, %s4550_s11 }
 0x604   : > { %1171 = vrot.lane.b32.xlu0 %v5140_v2, %s4549_s30 }
 0x605   : > { %1321 = vrot.lane.b32.xlu1 %v5104_v30, %s4550_s11 }
 0x67b   : > { %v1161_v39 = vpop.xlane.xlu0 %1160 }
 0x67c   : > { %4089 = vrcp.f32 %v1161_v39 }
 0x67d   : > { %v1164_v40 = vpop.xlane.xlu1 %1163 }
 0x67e   : > { %4091 = vrcp.f32 %v1164_v40 }
 0x67f   : > { %v1172_v42 = vpop.permute.xlu0 %1171 }
 0x680   : > { %3698 = vmatpush3.bf16.msra.mxu1 %v1172_v42 }
 0x681   : > { %3709 = vmatprep.subr.bf16.mxu1 %v4547_v0  ;;  %v1324_v52 = vpop.permute.xlu1 %1323 }
 0x682   : > { %v1329_v56 = vsel %vm976_vm1, %v1324_v52, 0 }
 0x685   : > { %v1322_v61 = vpop.permute.xlu1 %1321 }
 0x686   : > { %v4090_v44 = vpop.eup %4089 }
 0x687   : > { %v1167_v46 = vmul.f32 %v4090_v44, %v4086_v34 }
 0x688   : > { %v4092_v45 = vpop.eup %4091 }
 0x689   : > { %v1168_v47 = vmul.f32 %v4092_v45, %v4088_v36 }
 0x68b   : > { %v1169_v49 = vpack.c.bf16 %v1168_v47, %v1167_v46 }
 0x68d   : > { %3700 = vmatmul.mubr.msk.bf16.vlgmr.msra.gmra.mrb[16].mxu1 %vm976_vm1, %v1169_v49 }
 0x68e   : > { %3710 = vmatpush3.bf16.msra.mxu1 %v3989_v48  ;;  %3711 = vmatprep.mubr.msk.bf16.mxu1 %vm4548_vm0, %v4547_v0 }
 0x68f   : > { %3721 = vmatprep.subr.bf16.mxu1 %v4547_v0 }
 0x695   : > { %3712 = vmatmul.mubr.msk.bf16.vlgmr.msra.gmra.mrb[20].mxu1 %vm976_vm1, %v1091_v16 }
 0x696   : > { %3723 = vmatprep.mubr.msk.bf16.mxu1 %vm4548_vm0, %v4547_v0 }
 0x760   : > { %v1211_v50 = vpop.f32.mrb[16].mxu1 }
 0x761   : > { %v3701_v51 = vpop.f32.mrb[17].mxu1 }
 0x762   : > { %v1214_v53 = vpop.f32.mrb[18].mxu1 }
 0x763   : > { %v1218_v54 = vpack.c.bf16 %v1214_v53, %v1211_v50  ;;  %v3702_v55 = vpop.f32.mrb[19].mxu1 }
 0x765   : > { %3706 = vmatmul.mubr.msk.bf16.vlgmr.msra.gmra.mrb[8].mxu0 %vm976_vm1, %v1218_v54 }
 0x766   : > { %3716 = vmatpush3.bf16.xpose.msra.mxu0 %v1329_v56  ;;  %3717 = vmatprep.mubr.msk.bf16.mxu0 %vm4548_vm0, %v4547_v0 }
 0x767   : > { %3727 = vmatprep.subr.bf16.mxu0 %v4547_v0 }
 0x768   : > { %v1314_v57 = vpop.f32.mrb[20].mxu1 }
 0x769   : > { %v3713_v58 = vpop.f32.mrb[21].mxu1 }
 0x76a   : > { %v1317_v59 = vpop.f32.mrb[22].mxu1 }
 0x76b   : > { %v3714_v60 = vpop.f32.mrb[23].mxu1 }
 0x76d   : > { %3718 = vmatmul.mubr.msk.bf16.vlgmr.msra.gmra.mrb[12].mxu0 %vm976_vm1, %v1322_v61 }
 0x76e   : > { %3729 = vmatprep.mubr.msk.bf16.mxu0 %vm4548_vm0, %v4547_v0  ;;  %3728 = vmatpush3.bf16.msra.mxu0 %v3991_v37 }
 0x76f   : > { %3739 = vmatprep.subr.bf16.mxu0 %v4547_v0 }
 0x838   : > { %v1264_v62 = vpop.f32.mrb[8].mxu0 }
 0x839   : > { %v5181_v63 = vadd.f32 %v1314_v57, %v1264_v62  ;;  %v3707_v1 = vpop.f32.mrb[9].mxu0 }
 0x83a   : > { %v1267_v3 = vpop.f32.mrb[10].mxu0 }
 0x83b   : > { %v5183_v4 = vadd.f32 %v1317_v59, %v1267_v3  ;;  %v3708_v5 = vpop.f32.mrb[11].mxu0 }
 0x840   : > { %v1365_v6 = vpop.f32.mrb[12].mxu0 }
 0x841   : > { %v1366_v7 = vadd.f32 %v1365_v6, %v5124_v41  ;;  %v3719_v8 = vpop.f32.mrb[13].mxu0 }
 0x842   : > { %v1368_v9 = vpop.f32.mrb[14].mxu0 }
 0x843   : > { %v1369_v10 = vadd.f32 %v1368_v9, %v5128_v43  ;;  %v3720_v11 = vpop.f32.mrb[15].mxu0  ;;  %v1372_v12 = vsel %vm976_vm1, %v1366_v7, -inf }
 0x844   : > { %1373 = vmax.xlane.f32.xlu1 %v1372_v12 }
 0x845   : > { %v1375_v13 = vsel %vm976_vm1, %v1369_v10, -inf }
 0x846   : > { %1376 = vmax.xlane.f32.xlu0 %v1375_v13 }
 0x855   : > { %1395 = vrot.lane.b32.xlu1 %v5140_v2, %s4550_s11  ;;  %s5529_s11 = sld [smem:[#allocation36_spill]] }
 0x859   : > { %1497 = vrot.lane.b32.xlu1 %v5104_v30, %s4551_s16 }
 0x85b   : > { %p5531_p5 = scmp.ne.s32.totalorder %s5529_s11, 0 }
 0x8d1   : > { %v1374_v14 = vpop.xlane.xlu1 %1373 }
 0x8d2   : > { %v1378_v15 = vsub.f32 %v1366_v7, %v1374_v14 }
 0x8d3   : > { %v1377_v16 = vpop.xlane.xlu0 %1376 }
 0x8d4   : > { %v1380_v17 = vmul.f32 1.442695, %v1378_v15  ;;  %v1379_v18 = vsub.f32 %v1369_v10, %v1377_v16 }
 0x8d5   : > { %v1396_v19 = vpop.permute.xlu1 %1395 }
 0x8d6   : > { %4093 = vpow2.f32 %v1380_v17  ;;  %v1382_v20 = vmul.f32 1.442695, %v1379_v18  ;;  %3722 = vmatpush3.bf16.msra.mxu1 %v1396_v19  ;;  %v3992_v18 = vld [vmem:[#allocation14 + $0x18] sm:$0xff]  }
 0x8d7   : > { %3733 = vmatprep.subr.bf16.mxu1 %v4547_v0 }
 0x8d8   : > { %4095 = vpow2.f32 %v1382_v20 }
 0x8d9   : > { %v1498_v36 = vpop.permute.xlu1 %1497 }
 0x8e0   : > { %v4094_v21 = vpop.eup %4093 }
 0x8e1   : > { %v1384_v22 = vsel %vm976_vm1, %v4094_v21, 0.0 }
 0x8e2   : > { %v4096_v23 = vpop.eup %4095  ;;  %1385 = vadd.xlane.f32.xlu0 %v1384_v22 }
 0x8e3   : > { %v1387_v24 = vsel %vm976_vm1, %v4096_v23, 0.0 }
 0x8e6   : > { %1388 = vadd.xlane.f32.xlu0 %v1387_v24 }
 0x8fc   : > { %1499 = vrot.lane.b32.xlu0 %v5100_v25, %s4551_s16 }
 0x96f   : > { %v1386_v26 = vpop.xlane.xlu0 %1385 }
 0x970   : > { %4097 = vrcp.f32 %v1386_v26 }
 0x973   : > { %v1389_v27 = vpop.xlane.xlu0 %1388 }
 0x974   : > { %4099 = vrcp.f32 %v1389_v27 }
 0x977   : > { %v1500_v33 = vpop.permute.xlu0 %1499 }
 0x978   : > { %v1505_v35 = vsel %vm976_vm1, %v1500_v33, 0 }
 0x97a   : > { %v4098_v28 = vpop.eup %4097 }
 0x97b   : > { %v1392_v31 = vmul.f32 %v4098_v28, %v4094_v21 }
 0x97e   : > { %v4100_v29 = vpop.eup %4099 }
 0x97f   : > { %v1393_v32 = vmul.f32 %v4100_v29, %v4096_v23 }
 0x981   : > { %v1394_v34 = vpack.c.bf16 %v1393_v32, %v1392_v31 }
 0x983   : > { %3724 = vmatmul.mubr.msk.bf16.vlgmr.msra.gmra.mrb[24].mxu1 %vm976_vm1, %v1394_v34 }
 0x984   : > { %3734 = vmatpush3.bf16.xpose.msra.mxu1 %v1505_v35  ;;  %3735 = vmatprep.mubr.msk.bf16.mxu1 %vm4548_vm0, %v4547_v0 }
 0x985   : > { %3745 = vmatprep.subr.bf16.mxu1 %v4547_v0 }
 0x98b   : > { %3736 = vmatmul.mubr.msk.bf16.vlgmr.msra.gmra.mrb[28].mxu1 %vm976_vm1, %v1498_v36 }
 0x98c   : > { %3747 = vmatprep.mubr.msk.bf16.mxu1 %vm4548_vm0, %v4547_v0  ;;  %3746 = vmatpush3.bf16.msra.mxu1 %v3992_v18 }
 0x98d   : > { %3757 = vmatprep.subr.bf16.mxu1 %v4547_v0 }
 0xa56   : > { %v1435_v38 = vpop.f32.mrb[24].mxu1 }
 0xa57   : > { %v3725_v39 = vpop.f32.mrb[25].mxu1 }
 0xa58   : > { %v1438_v40 = vpop.f32.mrb[26].mxu1 }
 0xa59   : > { %v1442_v42 = vpack.c.bf16 %v1438_v40, %v1435_v38  ;;  %v3726_v44 = vpop.f32.mrb[27].mxu1 }
 0xa5b   : > { %3730 = vmatmul.mubr.msk.bf16.vlgmr.msra.gmra.mrb[16].mxu0 %vm976_vm1, %v1442_v42 }
 0xa5c   : > { %3741 = vmatprep.mubr.msk.bf16.mxu0 %vm4548_vm0, %v4547_v0 }
 0xa5e   : > { %v1541_v45 = vpop.f32.mrb[28].mxu1 }
 0xa5f   : > { %v1542_v46 = vadd.f32 %v1541_v45, %v5124_v41  ;;  %v3737_v47 = vpop.f32.mrb[29].mxu1 }
 0xa60   : > { %v1544_v48 = vpop.f32.mrb[30].mxu1 }
 0xa61   : > { %v1545_v49 = vadd.f32 %v1544_v48, %v5128_v43  ;;  %v3738_v50 = vpop.f32.mrb[31].mxu1  ;;  %v1548_v51 = vsel %vm976_vm1, %v1542_v46, -inf }
 0xa62   : > { %1549 = vmax.xlane.f32.xlu1 %v1548_v51 }
 0xa63   : > { %v1551_v52 = vsel %vm976_vm1, %v1545_v49, -inf }
 0xa64   : > { %1552 = vmax.xlane.f32.xlu0 %v1551_v52 }
 0xaef   : > { %v1550_v53 = vpop.xlane.xlu1 %1549 }
 0xaf0   : > { %v1554_v54 = vsub.f32 %v1542_v46, %v1550_v53 }
 0xaf1   : > { %v1553_v55 = vpop.xlane.xlu0 %1552 }
 0xaf2   : > { %v1556_v56 = vmul.f32 1.442695, %v1554_v54  ;;  %v1555_v57 = vsub.f32 %v1545_v49, %v1553_v55 }
 0xaf4   : > { %4101 = vpow2.f32 %v1556_v56  ;;  %v1558_v58 = vmul.f32 1.442695, %v1555_v57 }
 0xaf6   : > { %4103 = vpow2.f32 %v1558_v58 }
 0xafe   : > { %v4102_v59 = vpop.eup %4101 }
 0xaff   : > { %v1560_v60 = vsel %vm976_vm1, %v4102_v59, 0.0 }
 0xb00   : > { %v4104_v61 = vpop.eup %4103  ;;  %1561 = vadd.xlane.f32.xlu0 %v1560_v60 }
 0xb01   : > { %v1563_v62 = vsel %vm976_vm1, %v4104_v61, 0.0 }
 0xb02   : > { %1564 = vadd.xlane.f32.xlu1 %v1563_v62 }
 0xb13   : > { %1675 = vrot.lane.b32.xlu1 %v5100_v25, %s4552_s29 }
 0xb16   : > { %1571 = vrot.lane.b32.xlu0 %v5140_v2, %s4551_s16  ;;  %s3499_s16 = sshll.u32 %s5518_s27, 8 }
 0xb17   : > { %1673 = vrot.lane.b32.xlu1 %v5104_v30, %s4552_s29  ;;  %s5380_s23 = scalar_lea.hbm %s5530_s5, %s3499_s16 }
 0xb2e   : > { %v1488_v1 = vpop.f32.mrb[16].mxu0 }
 0xb2f   : > { %v5223_v3 = vadd.f32 %v1488_v1, %v5181_v63  ;;  %v3731_v5 = vpop.f32.mrb[17].mxu0  ;;  %v3993_v1 = vld [vmem:[#allocation14 + $0x20] sm:$0xff]  }
 0xb30   : > { %v1491_v6 = vpop.f32.mrb[18].mxu0 }
 0xb31   : > { %v5226_v7 = vadd.f32 %v1491_v6, %v5183_v4  ;;  %v3732_v8 = vpop.f32.mrb[19].mxu0 }
 0xb8d   : > { %v1562_v9 = vpop.xlane.xlu0 %1561 }
 0xb8e   : > { %4105 = vrcp.f32 %v1562_v9 }
 0xb8f   : > { %v1565_v10 = vpop.xlane.xlu1 %1564 }
 0xb90   : > { %4107 = vrcp.f32 %v1565_v10 }
 0xb91   : > { %v1572_v11 = vpop.permute.xlu0 %1571 }
 0xb92   : > { %3740 = vmatpush3.bf16.msra.mxu0 %v1572_v11 }
 0xb93   : > { %3751 = vmatprep.subr.bf16.mxu0 %v4547_v0  ;;  %v1676_v63 = vpop.permute.xlu1 %1675 }
 0xb94   : > { %v1681_v17 = vsel %vm976_vm1, %v1676_v63, 0 }
 0xb97   : > { %v1674_v4 = vpop.permute.xlu1 %1673 }
 0xb98   : > { %v4106_v12 = vpop.eup %4105 }
 0xb99   : > { %v1568_v14 = vmul.f32 %v4106_v12, %v4102_v59 }
 0xb9a   : > { %v4108_v13 = vpop.eup %4107 }
 0xb9b   : > { %v1569_v15 = vmul.f32 %v4108_v13, %v4104_v61 }
 0xb9d   : > { %v1570_v16 = vpack.c.bf16 %v1569_v15, %v1568_v14 }
 0xb9f   : > { %3742 = vmatmul.mubr.msk.bf16.vlgmr.msra.gmra.mrb[20].mxu0 %vm976_vm1, %v1570_v16 }
 0xba0   : > { %3752 = vmatpush3.bf16.xpose.msra.mxu0 %v1681_v17  ;;  %3753 = vmatprep.mubr.msk.bf16.mxu0 %vm4548_vm0, %v4547_v0 }
 0xba1   : > { %3763 = vmatprep.subr.bf16.mxu0 %v4547_v0 }
 0xba7   : > { %3754 = vmatmul.mubr.msk.bf16.vlgmr.msra.gmra.mrb[24].mxu0 %vm976_vm1, %v1674_v4 }
 0xba8   : > { %3765 = vmatprep.mubr.msk.bf16.mxu0 %vm4548_vm0, %v4547_v0  ;;  %3764 = vmatpush3.bf16.msra.mxu0 %v3993_v1 }
 0xba9   : > { %3775 = vmatprep.subr.bf16.mxu0 %v4547_v0 }
 0xc72   : > { %v1611_v19 = vpop.f32.mrb[20].mxu0 }
 0xc73   : > { %v3743_v20 = vpop.f32.mrb[21].mxu0 }
 0xc74   : > { %v1614_v21 = vpop.f32.mrb[22].mxu0 }
 0xc75   : > { %v1618_v22 = vpack.c.bf16 %v1614_v21, %v1611_v19  ;;  %v3744_v23 = vpop.f32.mrb[23].mxu0 }
 0xc77   : > { %3748 = vmatmul.mubr.msk.bf16.vlgmr.msra.gmra.mrb[32].mxu1 %vm976_vm1, %v1618_v22 }
 0xc78   : > { %3759 = vmatprep.mubr.msk.bf16.mxu1 %vm4548_vm0, %v4547_v0 }
 0xc7a   : > { %v1717_v24 = vpop.f32.mrb[24].mxu0 }
 0xc7b   : > { %v1718_v26 = vadd.f32 %v1717_v24, %v5124_v41  ;;  %v3755_v27 = vpop.f32.mrb[25].mxu0 }
 0xc7c   : > { %v1720_v28 = vpop.f32.mrb[26].mxu0 }
 0xc7d   : > { %v1721_v29 = vadd.f32 %v1720_v28, %v5128_v43  ;;  %v3756_v31 = vpop.f32.mrb[27].mxu0  ;;  %v1724_v32 = vsel %vm976_vm1, %v1718_v26, -inf }
 0xc7e   : > { %1725 = vmax.xlane.f32.xlu1 %v1724_v32 }
 0xc7f   : > { %v1727_v33 = vsel %vm976_vm1, %v1721_v29, -inf }
 0xc80   : > { %1728 = vmax.xlane.f32.xlu0 %v1727_v33 }
 0xc8f   : > { %1747 = vrot.lane.b32.xlu1 %v5140_v2, %s4552_s29  ;;  %s635_s29 = scalar_lea.vmem [#allocation19], %s5030_s14  ;;  %s4557_s14 = smov [#allocation19]  }
 0xc90   : > { %s4443_s27 = sshll.u32 %s4557_s14, 4  ;;  %s4444_s27 = int_to_ptr.vmem [resolvable:$false] %s4443_s27 }
 0xc91   : > { %s4445_s13 = scalar_lea.vmem %s4444_s27, 512 }
 0xc93   : > { %1849 = vrot.lane.b32.xlu1 %v5104_v30, %s4553_s6 }
 0xd0b   : > { %v1726_v34 = vpop.xlane.xlu1 %1725 }
 0xd0c   : > { %v1730_v35 = vsub.f32 %v1718_v26, %v1726_v34 }
 0xd0d   : > { %v1729_v36 = vpop.xlane.xlu0 %1728 }
 0xd0e   : > { %v1732_v37 = vmul.f32 1.442695, %v1730_v35  ;;  %v1731_v38 = vsub.f32 %v1721_v29, %v1729_v36 }
 0xd0f   : > { %v1748_v39 = vpop.permute.xlu1 %1747 }
 0xd10   : > { %4109 = vpow2.f32 %v1732_v37  ;;  %v1734_v40 = vmul.f32 1.442695, %v1731_v38  ;;  %3758 = vmatpush3.bf16.msra.mxu1 %v1748_v39 }
 0xd11   : > { %3769 = vmatprep.subr.bf16.mxu1 %v4547_v0 }
 0xd12   : > { %4111 = vpow2.f32 %v1734_v40 }
 0xd13   : > { %v1850_v62 = vpop.permute.xlu1 %1849 }
 0xd1a   : > { %v4110_v42 = vpop.eup %4109 }
 0xd1b   : > { %v1736_v44 = vsel %vm976_vm1, %v4110_v42, 0.0 }
 0xd1c   : > { %v4112_v45 = vpop.eup %4111  ;;  %1737 = vadd.xlane.f32.xlu0 %v1736_v44 }
 0xd1d   : > { %v1739_v46 = vsel %vm976_vm1, %v4112_v45, 0.0 }
 0xd20   : > { %1740 = vadd.xlane.f32.xlu0 %v1739_v46  ;;  %v3994_v46 = vld [vmem:[#allocation14 + $0x28] sm:$0xff]  }
 0xd36   : > { %1851 = vrot.lane.b32.xlu0 %v5100_v25, %s4553_s6 }
 0xd4a   : > { %v1664_v47 = vpop.f32.mrb[32].mxu1 }
 0xd4b   : > { %v1671_v48 = vadd.f32 %v1664_v47, %v5223_v3  ;;  %v3749_v49 = vpop.f32.mrb[33].mxu1 }
 0xd4c   : > { %v1667_v50 = vpop.f32.mrb[34].mxu1 }
 0xd4d   : > { %v1672_v51 = vadd.f32 %v1667_v50, %v5226_v7  ;;  %v3750_v52 = vpop.f32.mrb[35].mxu1 }
 0xda9   : > { %v1738_v53 = vpop.xlane.xlu0 %1737 }
 0xdaa   : > { %4113 = vrcp.f32 %v1738_v53 }
 0xdad   : > { %v1741_v54 = vpop.xlane.xlu0 %1740 }
 0xdae   : > { %4115 = vrcp.f32 %v1741_v54 }
 0xdb1   : > { %v1852_v59 = vpop.permute.xlu0 %1851 }
 0xdb2   : > { %v1857_v61 = vsel %vm976_vm1, %v1852_v59, 0 }
 0xdb4   : > { %v4114_v55 = vpop.eup %4113 }
 0xdb5   : > { %v1744_v57 = vmul.f32 %v4114_v55, %v4110_v42 }
 0xdb8   : > { %v4116_v56 = vpop.eup %4115 }
 0xdb9   : > { %v1745_v58 = vmul.f32 %v4116_v56, %v4112_v45 }
 0xdbb   : > { %v1746_v60 = vpack.c.bf16 %v1745_v58, %v1744_v57 }
 0xdbd   : > { %3760 = vmatmul.mubr.msk.bf16.vlgmr.msra.gmra.mrb[36].mxu1 %vm976_vm1, %v1746_v60 }
 0xdbe   : > { %3770 = vmatpush3.bf16.xpose.msra.mxu1 %v1857_v61  ;;  %3771 = vmatprep.mubr.msk.bf16.mxu1 %vm4548_vm0, %v4547_v0 }
 0xdbf   : > { %3781 = vmatprep.subr.bf16.mxu1 %v4547_v0 }
 0xdc5   : > { %3772 = vmatmul.mubr.msk.bf16.vlgmr.msra.gmra.mrb[40].mxu1 %vm976_vm1, %v1850_v62 }
 0xdc6   : > { %3783 = vmatprep.mubr.msk.bf16.mxu1 %vm4548_vm0, %v4547_v0  ;;  %3782 = vmatpush3.bf16.msra.mxu1 %v3994_v46 }
 0xdc7   : > { %3793 = vmatprep.subr.bf16.mxu1 %v4547_v0 }
 0xe90   : > { %v1787_v3 = vpop.f32.mrb[36].mxu1 }
 0xe91   : > { %v3761_v5 = vpop.f32.mrb[37].mxu1 }
 0xe92   : > { %v1790_v6 = vpop.f32.mrb[38].mxu1 }
 0xe93   : > { %v1794_v7 = vpack.c.bf16 %v1790_v6, %v1787_v3  ;;  %v3762_v8 = vpop.f32.mrb[39].mxu1 }
 0xe95   : > { %3766 = vmatmul.mubr.msk.bf16.vlgmr.msra.gmra.mrb[28].mxu0 %vm976_vm1, %v1794_v7 }
 0xe96   : > { %3777 = vmatprep.mubr.msk.bf16.mxu0 %vm4548_vm0, %v4547_v0 }
 0xe98   : > { %v1893_v9 = vpop.f32.mrb[40].mxu1 }
 0xe99   : > { %v1894_v10 = vadd.f32 %v1893_v9, %v5124_v41  ;;  %v3773_v11 = vpop.f32.mrb[41].mxu1 }
 0xe9a   : > { %v1896_v12 = vpop.f32.mrb[42].mxu1 }
 0xe9b   : > { %v1897_v13 = vadd.f32 %v1896_v12, %v5128_v43  ;;  %v3774_v14 = vpop.f32.mrb[43].mxu1  ;;  %v1900_v15 = vsel %vm976_vm1, %v1894_v10, -inf }
 0xe9c   : > { %1901 = vmax.xlane.f32.xlu1 %v1900_v15 }
 0xe9d   : > { %v1903_v63 = vsel %vm976_vm1, %v1897_v13, -inf }
 0xe9e   : > { %1904 = vmax.xlane.f32.xlu0 %v1903_v63 }
 0xf29   : > { %v1902_v16 = vpop.xlane.xlu1 %1901 }
 0xf2a   : > { %v1906_v17 = vsub.f32 %v1894_v10, %v1902_v16 }
 0xf2b   : > { %v1905_v4 = vpop.xlane.xlu0 %1904 }
 0xf2c   : > { %v1908_v18 = vmul.f32 1.442695, %v1906_v17  ;;  %v1907_v19 = vsub.f32 %v1897_v13, %v1905_v4 }
 0xf2e   : > { %4117 = vpow2.f32 %v1908_v18  ;;  %v1910_v20 = vmul.f32 1.442695, %v1907_v19 }
 0xf30   : > { %4119 = vpow2.f32 %v1910_v20 }
 0xf38   : > { %v4118_v21 = vpop.eup %4117 }
 0xf39   : > { %v1912_v22 = vsel %vm976_vm1, %v4118_v21, 0.0 }
 0xf3a   : > { %v4120_v23 = vpop.eup %4119  ;;  %1913 = vadd.xlane.f32.xlu0 %v1912_v22 }
 0xf3b   : > { %v1915_v24 = vsel %vm976_vm1, %v4120_v23, 0.0 }
 0xf3c   : > { %1916 = vadd.xlane.f32.xlu1 %v1915_v24 }
 0xf4d   : > { %2027 = vrot.lane.b32.xlu1 %v5100_v25, %s4554_s21 }
 0xf50   : > { %1923 = vrot.lane.b32.xlu0 %v5140_v2, %s4553_s6  ;;  %s3133_s6 = sshll.u32 %s635_s29, 4  ;;  %s5382_s6 = int_to_ptr.vmem [resolvable:$true] %s3133_s6 }
 0xf51   : > { %2025 = vrot.lane.b32.xlu1 %v5104_v30, %s4554_s21  ;;  %s4439_s28 = scalar_lea.vmem %s5382_s6, 256  ;;  %p4446_p3 = scmp.lt.s32.totalorder %s5382_s6, %s4444_s27 }
 0xf52   : > { %p4440_p7 = scmp.ne.s32.totalorder %s5382_s6, %s4439_s28  ;;  %p4447_p9 = scmp.lt.s32.totalorder %s4445_s13, %s4439_s28 }
 0xf54   : > { %p4441_p11 = pnand %p4440_p7, %p5531_p5  ;;  %p4448_p0 = por %p4447_p9, %p4446_p3 }
 0xf56   : > { %p4442_p6 = pneg %p4441_p11 }
 0xf58   : > { %p4449_p2 = pnand %p4448_p0, %p4442_p6 }
 0xf68   : > { %v1840_v26 = vpop.f32.mrb[28].mxu0 }
 0xf69   : > { %v5280_v27 = vadd.f32 %v1840_v26, %v1671_v48  ;;  %v3767_v28 = vpop.f32.mrb[29].mxu0 }
 0xf6a   : > { %v1843_v29 = vpop.f32.mrb[30].mxu0 }
 0xf6b   : > { %v5282_v31 = vadd.f32 %v1843_v29, %v1672_v51  ;;  %v3768_v32 = vpop.f32.mrb[31].mxu0 }
 0xfc7   : > { %v1914_v33 = vpop.xlane.xlu0 %1913 }
 0xfc8   : > { %4121 = vrcp.f32 %v1914_v33 }
 0xfc9   : > { %v1917_v34 = vpop.xlane.xlu1 %1916 }
 0xfca   : > { %4123 = vrcp.f32 %v1917_v34 }
 0xfcb   : > { %v1924_v35 = vpop.permute.xlu0 %1923 }
 0xfcc   : > { %3776 = vmatpush3.bf16.msra.mxu0 %v1924_v35 }
 0xfcd   : > { %3787 = vmatprep.subr.bf16.mxu0 %v4547_v0  ;;  %v2028_v40 = vpop.permute.xlu1 %2027 }
 0xfce   : > { %v2033_v44 = vsel %vm976_vm1, %v2028_v40, 0 }
 0xfd1   : > { %v2026_v45 = vpop.permute.xlu1 %2025 }
 0xfd2   : > { %v4122_v36 = vpop.eup %4121 }
 0xfd3   : > { %v1920_v38 = vmul.f32 %v4122_v36, %v4118_v21 }
 0xfd4   : > { %v4124_v37 = vpop.eup %4123 }
 0xfd5   : > { %v1921_v39 = vmul.f32 %v4124_v37, %v4120_v23  ;;  %v3995_v23 = vld [vmem:[#allocation14 + $0x30] sm:$0xff]  }
 0xfd7   : > { %v1922_v42 = vpack.c.bf16 %v1921_v39, %v1920_v38 }
 0xfd9   : > { %3778 = vmatmul.mubr.msk.bf16.vlgmr.msra.gmra.mrb[32].mxu0 %vm976_vm1, %v1922_v42 }
 0xfda   : > { %3788 = vmatpush3.bf16.xpose.msra.mxu0 %v2033_v44  ;;  %3789 = vmatprep.mubr.msk.bf16.mxu0 %vm4548_vm0, %v4547_v0 }
 0xfdb   : > { %3799 = vmatprep.subr.bf16.mxu0 %v4547_v0 }
 0xfe1   : > { %3790 = vmatmul.mubr.msk.bf16.vlgmr.msra.gmra.mrb[36].mxu0 %vm976_vm1, %v2026_v45 }
 0xfe2   : > { %3801 = vmatprep.mubr.msk.bf16.mxu0 %vm4548_vm0, %v4547_v0  ;;  %3800 = vmatpush3.bf16.msra.mxu0 %v3995_v23  ;;  %v4006_v23 = vld [vmem:[#allocation16 + $0x28] ss:$16 sps:$4 sm:$0xff]  }
 0xfe3   : > { %3811 = vmatprep.subr.bf16.mxu0 %v4547_v0 }
0x10ac   : > { %v1963_v47 = vpop.f32.mrb[32].mxu0 }
0x10ad   : > { %v3779_v48 = vpop.f32.mrb[33].mxu0 }
0x10ae   : > { %v1966_v49 = vpop.f32.mrb[34].mxu0  ;;  %v3996_v48 = vld [vmem:[#allocation14 + $0x38] sm:$0xff]  }
0x10af   : > { %v1970_v50 = vpack.c.bf16 %v1966_v49, %v1963_v47  ;;  %v3780_v51 = vpop.f32.mrb[35].mxu0 }
0x10b1   : > { %3784 = vmatmul.mubr.msk.bf16.vlgmr.msra.gmra.mrb[44].mxu1 %vm976_vm1, %v1970_v50 }
0x10b2   : > { %3795 = vmatprep.mubr.msk.bf16.mxu1 %vm4548_vm0, %v4547_v0 }
0x10b4   : > { %v2069_v52 = vpop.f32.mrb[36].mxu0 }
0x10b5   : > { %v2070_v53 = vadd.f32 %v2069_v52, %v5124_v41  ;;  %v3791_v54 = vpop.f32.mrb[37].mxu0 }
0x10b6   : > { %v2072_v55 = vpop.f32.mrb[38].mxu0 }
0x10b7   : > { %v2073_v56 = vadd.f32 %v2072_v55, %v5128_v43  ;;  %v3792_v57 = vpop.f32.mrb[39].mxu0  ;;  %v2076_v58 = vsel %vm976_vm1, %v2070_v53, -inf }
0x10b8   : > { %2077 = vmax.xlane.f32.xlu1 %v2076_v58 }
0x10b9   : > { %v2079_v59 = vsel %vm976_vm1, %v2073_v56, -inf }
0x10ba   : > { %2080 = vmax.xlane.f32.xlu0 %v2079_v59 }
0x10c9   : > { %2099 = vrot.lane.b32.xlu1 %v5140_v2, %s4554_s21 }
0x10cd   : > { %2201 = vrot.lane.b32.xlu1 %v5104_v30, %s4555_s1 }
0x1145   : > { %v2078_v60 = vpop.xlane.xlu1 %2077 }
0x1146   : > { %v2082_v61 = vsub.f32 %v2070_v53, %v2078_v60 }
0x1147   : > { %v2081_v62 = vpop.xlane.xlu0 %2080 }
0x1148   : > { %v2084_v1 = vmul.f32 1.442695, %v2082_v61  ;;  %v2083_v3 = vsub.f32 %v2073_v56, %v2081_v62 }
0x1149   : > { %v2100_v5 = vpop.permute.xlu1 %2099 }
0x114a   : > { %4125 = vpow2.f32 %v2084_v1  ;;  %v2086_v6 = vmul.f32 1.442695, %v2083_v3  ;;  %3794 = vmatpush3.bf16.msra.mxu1 %v2100_v5 }
0x114b   : > { %3805 = vmatprep.subr.bf16.mxu1 %v4547_v0 }
0x114c   : > { %4127 = vpow2.f32 %v2086_v6 }
0x114d   : > { %v2202_v22 = vpop.permute.xlu1 %2201 }
0x1154   : > { %v4126_v7 = vpop.eup %4125 }
0x1155   : > { %v2088_v8 = vsel %vm976_vm1, %v4126_v7, 0.0 }
0x1156   : > { %v4128_v9 = vpop.eup %4127  ;;  %2089 = vadd.xlane.f32.xlu0 %v2088_v8  ;;  %v3420_v8 = vld [vmem:[%s5527_s7] ss:$0 sm:$0xff] }
0x1157   : > { %v2091_v10 = vsel %vm976_vm1, %v4128_v9, 0.0 }
0x115a   : > { %2092 = vadd.xlane.f32.xlu0 %v2091_v10 }
0x1170   : > { %2203 = vrot.lane.b32.xlu0 %v5100_v25, %s4555_s1 }
0x1184   : > { %v2016_v30 = vpop.f32.mrb[44].mxu1 }
0x1185   : > { %v2023_v11 = vadd.f32 %v2016_v30, %v5280_v27  ;;  %v3785_v12 = vpop.f32.mrb[45].mxu1 }
0x1186   : > { %v2019_v13 = vpop.f32.mrb[46].mxu1 }
0x1187   : > { %v2024_v14 = vadd.f32 %v2019_v13, %v5282_v31  ;;  %v3786_v15 = vpop.f32.mrb[47].mxu1 }
0x1188   : > { %v4149_v15 = vld [vmem:[%s5034_s18] sm:$0xff] }
0x11e3   : > { %v2090_v63 = vpop.xlane.xlu0 %2089 }
0x11e4   : > { %4129 = vrcp.f32 %v2090_v63 }
0x11e7   : > { %v2093_v16 = vpop.xlane.xlu0 %2092 }
0x11e8   : > { %4131 = vrcp.f32 %v2093_v16  ;;  %v4150_v16 = vld [vmem:[%s5034_s18 + $0x8] sm:$0xff] }
0x11eb   : > { %v2204_v20 = vpop.permute.xlu0 %2203 }
0x11ec   : > { %v2209_v25 = vsel %vm976_vm1, %v2204_v20, 0  ;;  %v4002_v20 = vld [vmem:[#allocation16 + $0xc] ss:$16 sps:$4 sm:$0xff]  }
0x11ee   : > { %v4130_v17 = vpop.eup %4129 }
0x11ef   : > { %v2096_v18 = vmul.f32 %v4130_v17, %v4126_v7 }
0x11f2   : > { %v4132_v4 = vpop.eup %4131 }
0x11f3   : > { %v2097_v19 = vmul.f32 %v4132_v4, %v4128_v9  ;;  %v3997_v4 = vld [vmem:[#allocation16] ss:$16 sps:$4 sm:$0xff]  }
0x11f5   : > { %v2098_v21 = vpack.c.bf16 %v2097_v19, %v2096_v18  ;;  %v3999_v18 = vld [vmem:[#allocation16 + $0x4] ss:$16 sps:$4 sm:$0xff]   ;;  %v4000_v19 = vld [vmem:[#allocation16 + $0x8] ss:$16 sps:$4 sm:$0xff]  }
0x11f7   : > { %3796 = vmatmul.mubr.msk.bf16.vlgmr.msra.gmra.mrb[48].mxu1 %vm976_vm1, %v2098_v21  ;;  %v4005_v21 = vld [vmem:[#allocation16 + $0x24] ss:$16 sps:$4 sm:$0xff]  }
0x11f8   : > { %3806 = vmatpush3.bf16.xpose.msra.mxu1 %v2209_v25  ;;  %3807 = vmatprep.mubr.msk.bf16.mxu1 %vm4548_vm0, %v4547_v0  ;;  %v4008_v25 = vld [vmem:[#allocation16 + $0x2c] ss:$16 sps:$4 sm:$0xff]  }
0x11f9   : > { %3817 = vmatprep.subr.bf16.mxu1 %v4547_v0 }
0x11ff   : > { %3808 = vmatmul.mubr.msk.bf16.vlgmr.msra.gmra.mrb[52].mxu1 %vm976_vm1, %v2202_v22  ;;  %v4003_v22 = vld [vmem:[#allocation16 + $0x20] ss:$16 sps:$4 sm:$0xff]  }
0x1200   : > { %3819 = vmatprep.mubr.msk.bf16.mxu1 %vm4548_vm0, %v4547_v0  ;;  %3818 = vmatpush3.bf16.msra.mxu1 %v3996_v48  ;;  %v4030_v48 = vld [vmem:[#allocation16 + $0xa8] ss:$16 sps:$4 sm:$0xff]  }
0x1201   : > { %2681 = vmatprep.subr.bf16.mxu1 %v4002_v20  ;;  %v4054_v20 = vld [vmem:[#allocation17 + $0xd0] sm:$0xff]  }
0x12ca   : > { %v2139_v24 = vpop.f32.mrb[48].mxu1 }
0x12cb   : > { %v3797_v26 = vpop.f32.mrb[49].mxu1 }
0x12cc   : > { %v2142_v27 = vpop.f32.mrb[50].mxu1 }
0x12cd   : > { %v2146_v28 = vpack.c.bf16 %v2142_v27, %v2139_v24  ;;  %v3798_v29 = vpop.f32.mrb[51].mxu1 }
0x12cf   : > { %3802 = vmatmul.mubr.msk.bf16.vlgmr.msra.gmra.mrb[40].mxu0 %vm976_vm1, %v2146_v28 }
0x12d0   : > { %3813 = vmatprep.mubr.msk.bf16.mxu0 %vm4548_vm0, %v4547_v0 }
0x12d2   : > { %v2245_v31 = vpop.f32.mrb[52].mxu1 }
0x12d3   : > { %v2246_v32 = vadd.f32 %v2245_v31, %v5124_v41  ;;  %v3809_v33 = vpop.f32.mrb[53].mxu1 }
0x12d4   : > { %v2248_v34 = vpop.f32.mrb[54].mxu1 }
0x12d5   : > { %v2249_v35 = vadd.f32 %v2248_v34, %v5128_v43  ;;  %v3810_v36 = vpop.f32.mrb[55].mxu1  ;;  %v2252_v37 = vsel %vm976_vm1, %v2246_v32, -inf  ;;  %v4011_v34 = vld [vmem:[#allocation16 + $0x44] ss:$16 sps:$4 sm:$0xff]  }
0x12d6   : > { %2253 = vmax.xlane.f32.xlu1 %v2252_v37  ;;  %v4009_v36 = vld [vmem:[#allocation16 + $0x40] ss:$16 sps:$4 sm:$0xff]   ;;  %v4012_v37 = vld [vmem:[#allocation16 + $0x48] ss:$16 sps:$4 sm:$0xff]  }
0x12d7   : > { %v2255_v38 = vsel %vm976_vm1, %v2249_v35, -inf }
0x12d8   : > { %2256 = vmax.xlane.f32.xlu0 %v2255_v38  ;;  %v4017_v38 = vld [vmem:[#allocation16 + $0x64] ss:$16 sps:$4 sm:$0xff]  }
0x1363   : > { %v2254_v39 = vpop.xlane.xlu1 %2253 }
0x1364   : > { %v2258_v40 = vsub.f32 %v2246_v32, %v2254_v39  ;;  %v4020_v39 = vld [vmem:[#allocation16 + $0x6c] ss:$16 sps:$4 sm:$0xff]  }
0x1365   : > { %v2257_v42 = vpop.xlane.xlu0 %2256 }
0x1366   : > { %v2260_v44 = vmul.f32 1.442695, %v2258_v40  ;;  %v2259_v45 = vsub.f32 %v2249_v35, %v2257_v42  ;;  %v4014_v35 = vld [vmem:[#allocation16 + $0x4c] ss:$16 sps:$4 sm:$0xff]   ;;  %v4015_v40 = vld [vmem:[#allocation16 + $0x60] ss:$16 sps:$4 sm:$0xff]  }
0x1367   : > { %v4018_v42 = vld [vmem:[#allocation16 + $0x68] ss:$16 sps:$4 sm:$0xff]  }
0x1368   : > { %4133 = vpow2.f32 %v2260_v44  ;;  %v2262_v0 = vmul.f32 1.442695, %v2259_v45  ;;  %v4023_v44 = vld [vmem:[#allocation16 + $0x84] ss:$16 sps:$4 sm:$0xff]   ;;  %v4026_v45 = vld [vmem:[#allocation16 + $0x8c] ss:$16 sps:$4 sm:$0xff]  }
0x136a   : > { %4135 = vpow2.f32 %v2262_v0  ;;  %v4021_v0 = vld [vmem:[#allocation16 + $0x80] ss:$16 sps:$4 sm:$0xff]  }
0x1372   : > { %v4134_v41 = vpop.eup %4133 }
0x1373   : > { %v2264_v46 = vsel %vm976_vm1, %v4134_v41, 0.0 }
0x1374   : > { %v4136_v47 = vpop.eup %4135  ;;  %2265 = vadd.xlane.f32.xlu0 %v2264_v46  ;;  %v4029_v46 = vld [vmem:[#allocation16 + $0xa4] ss:$16 sps:$4 sm:$0xff]  }
0x1375   : > { %v2267_v43 = vsel %vm976_vm1, %v4136_v47, 0.0 }
0x1376   : > { %2268 = vadd.xlane.f32.xlu1 %v2267_v43  ;;  %v4027_v43 = vld [vmem:[#allocation16 + $0xa0] ss:$16 sps:$4 sm:$0xff]  }
0x138a   : > { %2275 = vrot.lane.b32.xlu0 %v5140_v2, %s4555_s1 }
0x13a2   : > { %v2192_v49 = vpop.f32.mrb[40].mxu0 }
0x13a3   : > { %v2199_v50 = vadd.f32 %v2192_v49, %v2023_v11  ;;  %v3803_v51 = vpop.f32.mrb[41].mxu0  ;;  %v4035_v49 = vld [vmem:[#allocation16 + $0xc4] ss:$16 sps:$4 sm:$0xff]  }
0x13a4   : > { %v2195_v52 = vpop.f32.mrb[42].mxu0  ;;  %v4033_v51 = vld [vmem:[#allocation16 + $0xc0] ss:$16 sps:$4 sm:$0xff]  }
0x13a5   : > { %v2200_v53 = vadd.f32 %v2195_v52, %v2024_v14  ;;  %v3804_v54 = vpop.f32.mrb[43].mxu0  ;;  %v4036_v52 = vld [vmem:[#allocation16 + $0xc8] ss:$16 sps:$4 sm:$0xff]  }
0x13a6   : > { %v4044_v54 = vld [vmem:[#allocation16 + $0xec] ss:$16 sps:$4 sm:$0xff]  }
0x1401   : > { %v2266_v55 = vpop.xlane.xlu0 %2265 }
0x1402   : > { %4137 = vrcp.f32 %v2266_v55  ;;  %v4039_v55 = vld [vmem:[#allocation16 + $0xe0] ss:$16 sps:$4 sm:$0xff]  }
0x1403   : > { %v2269_v56 = vpop.xlane.xlu1 %2268 }
0x1404   : > { %4139 = vrcp.f32 %v2269_v56  ;;  %v4042_v56 = vld [vmem:[#allocation16 + $0xe8] ss:$16 sps:$4 sm:$0xff]  }
0x1405   : > { %v2276_v57 = vpop.permute.xlu0 %2275 }
0x1406   : > { %3812 = vmatpush3.bf16.msra.mxu0 %v2276_v57  ;;  %v4556_v57 = vmov 0  }
0x1407   : > { %2638 = vmatprep.subr.bf16.mxu0 %v3999_v18  ;;  %v4052_v18 = vld [vmem:[#allocation17 + $0x88] sm:$0xff]  }
0x140c   : > { %v4138_v58 = vpop.eup %4137 }
0x140d   : > { %v2272_v60 = vmul.f32 %v4138_v58, %v4134_v41  ;;  %v4024_v41 = vld [vmem:[#allocation16 + $0x88] ss:$16 sps:$4 sm:$0xff]   ;;  %v4045_v58 = vld [vmem:[#allocation17 + $0x40] sm:$0xff]  }
0x140e   : > { %v4140_v59 = vpop.eup %4139 }
0x140f   : > { %v2273_v61 = vmul.f32 %v4140_v59, %v4136_v47  ;;  %v4032_v47 = vld [vmem:[#allocation16 + $0xac] ss:$16 sps:$4 sm:$0xff]   ;;  %v4046_v59 = vld [vmem:[#allocation17 + $0xc0] sm:$0xff]  }
0x1411   : > { %v2274_v62 = vpack.c.bf16 %v2273_v61, %v2272_v60 }
0x1413   : > { %3814 = vmatmul.mubr.msk.bf16.vlgmr.msra.gmra.mrb[44].mxu0 %vm976_vm1, %v2274_v62 }
0x1414   : > { %2639 = vmatpush1.bf16.msra.mxu0 %v3997_v4  ;;  %2670 = vmatprep.mubr.bf16.mxu0 %v4556_v57  ;;  %v4051_v4 = vld [vmem:[#allocation17 + $0x8] sm:$0xff]  }
0x1415   : > { %2640 = vmatprep.subr.bf16.mxu0 %v4005_v21  ;;  %v4055_v21 = vld [vmem:[#allocation17 + $0x10] sm:$0xff]  }
0x1418   : > { %2641 = vmatpush1.bf16.msra.mxu0 %v4003_v22  ;;  %v4057_v22 = vld [vmem:[#allocation17 + $0x58] sm:$0xff]  }
0x1419   : > { %2642 = vmatprep.subr.bf16.mxu0 %v4011_v34  ;;  %v4067_v34 = vld [vmem:[#allocation17 + $0x28] sm:$0xff]  }
0x141c   : > { %2643 = vmatpush1.bf16.msra.mxu0 %v4009_v36  ;;  %v4069_v36 = vld [vmem:[#allocation17 + $0x70] sm:$0xff]  }
0x141d   : > { %2644 = vmatprep.subr.bf16.mxu0 %v4017_v38  ;;  %v4071_v38 = vld [vmem:[#allocation17 + $0x30] sm:$0xff]  }
0x1420   : > { %2645 = vmatpush1.bf16.msra.mxu0 %v4015_v40  ;;  %v4073_v40 = vld [vmem:[#allocation17 + $0x78] sm:$0xff]  }
0x1421   : > { %2646 = vmatprep.subr.bf16.mxu0 %v4023_v44  ;;  %v4075_v44 = vld [vmem:[#allocation17 + $0x38] sm:$0xff]  }
0x1424   : > { %2647 = vmatpush1.bf16.msra.mxu0 %v4021_v0  ;;  %v2458_v0 = vlaneseq }
0x1425   : > { %2648 = vmatprep.subr.bf16.mxu0 %v4029_v46 }
0x1428   : > { %2649 = vmatpush1.bf16.msra.mxu0 %v4027_v43  ;;  %v2456_v43 = vld [vmem:[%s5528_s19] sm:$0xf] }
0x1429   : > { %2650 = vmatprep.subr.bf16.mxu0 %v4035_v49 }
0x142c   : > { %2651 = vmatpush1.bf16.msra.mxu0 %v4033_v51 }
0x14e6   : > { %v2315_v2 = vpop.f32.mrb[44].mxu0 }
0x14e7   : > { %v3815_v1 = vpop.f32.mrb[45].mxu0 }
0x14e8   : > { %v2318_v3 = vpop.f32.mrb[46].mxu0 }
0x14e9   : > { %v2322_v5 = vpack.c.bf16 %v2318_v3, %v2315_v2  ;;  %v3816_v6 = vpop.f32.mrb[47].mxu0 }
0x14eb   : > { %3820 = vmatmul.mubr.msk.bf16.vlgmr.msra.gmra.mrb[56].mxu1 %vm976_vm1, %v2322_v5 }
0x14ec   : > { %2682 = vmatpush1.bf16.msra.mxu1 %v4000_v19  ;;  %2713 = vmatprep.mubr.bf16.mxu1 %v4556_v57  ;;  %v4053_v19 = vld [vmem:[#allocation17 + $0x50] sm:$0xff]  }
0x14ed   : > { %2683 = vmatprep.subr.bf16.mxu1 %v4008_v25  ;;  %v4056_v25 = vld [vmem:[#allocation17 + $0x90] sm:$0xff]  }
0x14f0   : > { %2684 = vmatpush1.bf16.msra.mxu1 %v4006_v23  ;;  %v4058_v23 = vld [vmem:[#allocation17 + $0xd8] sm:$0xff]  }
0x14f1   : > { %2685 = vmatprep.subr.bf16.mxu1 %v4014_v35  ;;  %v4068_v35 = vld [vmem:[#allocation17 + $0xa8] sm:$0xff]  }
0x14f4   : > { %2686 = vmatpush1.bf16.msra.mxu1 %v4012_v37  ;;  %v4070_v37 = vld [vmem:[#allocation17 + $0xf0] sm:$0xff]  }
0x14f5   : > { %2687 = vmatprep.subr.bf16.mxu1 %v4020_v39  ;;  %v4072_v39 = vld [vmem:[#allocation17 + $0xb0] sm:$0xff]  }
0x14f8   : > { %2688 = vmatpush1.bf16.msra.mxu1 %v4018_v42  ;;  %v4074_v42 = vld [vmem:[#allocation17 + $0xf8] sm:$0xff]  }
0x14f9   : > { %2689 = vmatprep.subr.bf16.mxu1 %v4026_v45  ;;  %v4076_v45 = vld [vmem:[#allocation17 + $0xb8] sm:$0xff]  }
0x14fc   : > { %2690 = vmatpush1.bf16.msra.mxu1 %v4024_v41  ;;  %v2459_v41 = vshrl.u32 %v2458_v0, 7 }
0x14fd   : > { %2691 = vmatprep.subr.bf16.mxu1 %v4032_v47 }
0x14fe   : > { %v2460_v46 = vsub.s32 0, %v2459_v41  ;;  %v2468_v47 = vsub.s32 2, %v2459_v41  ;;  %v2472_v49 = vsub.s32 3, %v2459_v41 }
0x1500   : > { %2692 = vmatpush1.bf16.msra.mxu1 %v4030_v48  ;;  %v2464_v48 = vsub.s32 1, %v2459_v41  ;;  %v2469_v51 = vrot.slane %v2456_v43, %v2468_v47 }
0x15be   : > { %v2368_v7 = vpop.f32.mrb[56].mxu1 }
0x15bf   : > { %v2375_v9 = vadd.f32 %v2368_v7, %v2199_v50  ;;  %v3821_v10 = vpop.f32.mrb[57].mxu1  ;;  %v4038_v50 = vld [vmem:[#allocation16 + $0xcc] ss:$16 sps:$4 sm:$0xff]   ;;  %v3421_v7 = vld [vmem:[%s5527_s7 + $0x1] ss:$0 sm:$0xff] }
0x15c0   : > { %v2371_v30 = vpop.f32.mrb[58].mxu1  ;;  %2693 = vmatprep.subr.bf16.mxu1 %v4038_v50  ;;  %v2461_v50 = vrot.slane %v2456_v43, %v2460_v46 }
0x15c1   : > { %v2382_v11 = vadd.f32 %v3420_v8, %v2375_v9  ;;  %v2376_v12 = vadd.f32 %v2371_v30, %v2200_v53  ;;  %v3822_v13 = vpop.f32.mrb[59].mxu1  ;;  %v4041_v53 = vld [vmem:[#allocation16 + $0xe4] ss:$16 sps:$4 sm:$0xff]   ;;  %2694 = vmatpush1.bf16.msra.mxu1 %v4036_v52  ;;  %v3422_v30 = vld [vmem:[%s5527_s7 + $0x2] ss:$0 sm:$0xff]  ;;  %v2465_v52 = vrot.slane %v2456_v43, %v2464_v48 }
0x15c2   : > { %2652 = vmatprep.subr.bf16.mxu0 %v4041_v53  ;;  %2695 = vmatprep.subr.bf16.mxu1 %v4044_v54  ;;  %v2473_v53 = vrot.slane %v2456_v43, %v2472_v49 }
0x15c3   : > { %v2383_v14 = vadd.f32 %v3420_v8, %v2376_v12  ;;  %v2384_v63 = vadd.f32 %v4149_v15, %v2382_v11  ;;  %2653 = vmatpush1.bf16.msra.mxu0 %v4039_v55  ;;  %v4048_v15 = vld [vmem:[#allocation17 + $0x80] sm:$0xff]  }
0x15c4   : > { %3575 = vmatprep.subr.bf16.mxu0 %v4045_v58 }
0x15c5   : > { %2388 = vadd.xlane.f32.xlu1 %v2384_v63  ;;  %v2385_v17 = vadd.f32 %v4150_v16, %v2383_v14  ;;  %2696 = vmatpush1.bf16.msra.mxu1 %v4042_v56  ;;  %v4047_v14 = vld [vmem:[#allocation17] sm:$0xff]   ;;  %v4049_v16 = vld [vmem:[#allocation17 + $0x48] sm:$0xff]  }
0x15c6   : > { %3597 = vmatprep.subr.bf16.mxu1 %v4046_v59 }
0x15c9   : > { %2390 = vadd.xlane.f32.xlu1 %v2385_v17 }
0x1652   : > { %v2389_v24 = vpop.xlane.xlu1 %2388 }
0x1653   : > { %v2393_v26 = vmul.f32 0.0078125, %v2389_v24  ;;  %v4059_v24 = vld [vmem:[#allocation17 + $0x18] sm:$0xff]  }
0x1655   : > { %v5339_v27 = vsub.f32 %v2384_v63, %v2393_v26  ;;  %v4060_v26 = vld [vmem:[#allocation17 + $0x98] sm:$0xff]  }
0x1656   : > { %v2391_v28 = vpop.xlane.xlu1 %2390 }
0x1657   : > { %v2394_v29 = vmul.f32 0.0078125, %v2391_v28  ;;  %v2397_v31 = vmul.f32 %v5339_v27, %v5339_v27  ;;  %v4062_v28 = vld [vmem:[#allocation17 + $0xe0] sm:$0xff]  }
0x1659   : > { %v5343_v32 = vsub.f32 %v2385_v17, %v2394_v29  ;;  %2399 = vadd.xlane.f32.xlu1 %v2397_v31  ;;  %v4050_v17 = vld [vmem:[#allocation17 + $0xc8] sm:$0xff]   ;;  %v4063_v29 = vld [vmem:[#allocation17 + $0x20] sm:$0xff]  }
0x165a   : > { %v4064_v31 = vld [vmem:[#allocation17 + $0xa0] sm:$0xff]  }
0x165b   : > { %v2398_v33 = vmul.f32 %v5343_v32, %v5343_v32 }
0x165d   : > { %2401 = vadd.xlane.f32.xlu1 %v2398_v33  ;;  %v4066_v33 = vld [vmem:[#allocation17 + $0xe8] sm:$0xff]  }
0x16e6   : > { %v2400_v60 = vpop.xlane.xlu1 %2399 }
0x16e7   : > { %v2403_v61 = vmul.f32 0.0078125, %v2400_v60 }
0x16e9   : > { %v2405_v62 = vadd.f32 1e-05, %v2403_v61 }
0x16ea   : > { %v2402_v2 = vpop.xlane.xlu1 %2401 }
0x16eb   : > { %4141 = vrsqrt.f32 %v2405_v62  ;;  %v2404_v1 = vmul.f32 0.0078125, %v2402_v2 }
0x16ed   : > { %v2406_v3 = vadd.f32 1e-05, %v2404_v1 }
0x16ef   : > { %4143 = vrsqrt.f32 %v2406_v3 }
0x16f5   : > { %v4142_v5 = vpop.eup %4141 }
0x16f6   : > { %v2409_v6 = vmul.f32 %v4142_v5, %v5339_v27  ;;  %v4061_v27 = vld [vmem:[#allocation17 + $0x60] sm:$0xff]  }
0x16f8   : > { %v2415_v10 = vmul.f32 %v3421_v7, %v2409_v6 }
0x16f9   : > { %v4144_v8 = vpop.eup %4143 }
0x16fa   : > { %v2410_v9 = vmul.f32 %v4144_v8, %v5343_v32  ;;  %v5355_v12 = vadd.f32 %v3422_v30, %v2415_v10  ;;  %v4065_v32 = vld [vmem:[#allocation17 + $0x68] sm:$0xff]  }
0x16fc   : > { %v2416_v11 = vmul.f32 %v3421_v7, %v2410_v9 }
0x16fe   : > { %v5357_v13 = vadd.f32 %v3422_v30, %v2416_v11 }
0x1700   : > { %v2423_v63 = vpack.c.bf16 %v5357_v13, %v5355_v12 }
0x1702   : > { %2671 = vmatmul.mubr.bf16.vlgmr.msra.gmra.mrb[48].mxu0 %v2423_v63  ;;  %2714 = vmatmul.mubr.bf16.vlgmr.msra.gmra.mrb[60].mxu1 %v2423_v63 }
0x1703   : > { %3576 = vmatpush3.bf16.msra.mxu0 %v4047_v14  ;;  %3598 = vmatpush3.bf16.msra.mxu1 %v4048_v15 }
0x1704   : > { %3577 = vmatprep.subr.bf16.mxu0 %v4049_v16  ;;  %3599 = vmatprep.subr.bf16.mxu1 %v4050_v17 }
0x1707   : > { %3578 = vmatpush3.bf16.msra.mxu0 %v4051_v4  ;;  %3600 = vmatpush3.bf16.msra.mxu1 %v4052_v18 }
0x1708   : > { %3579 = vmatprep.subr.bf16.mxu0 %v4053_v19  ;;  %3601 = vmatprep.subr.bf16.mxu1 %v4054_v20 }
0x170b   : > { %3580 = vmatpush3.bf16.msra.mxu0 %v4055_v21  ;;  %3602 = vmatpush3.bf16.msra.mxu1 %v4056_v25  ;;  %v3455_v25 = vld [vmem:[%s5527_s7 + $0x3] ss:$0 sm:$0xff] }
0x170c   : > { %3581 = vmatprep.subr.bf16.mxu0 %v4057_v22  ;;  %3603 = vmatprep.subr.bf16.mxu1 %v4058_v23 }
0x170f   : > { %3582 = vmatpush3.bf16.msra.mxu0 %v4059_v24  ;;  %3604 = vmatpush3.bf16.msra.mxu1 %v4060_v26 }
0x1710   : > { %3583 = vmatprep.subr.bf16.mxu0 %v4061_v27  ;;  %3605 = vmatprep.subr.bf16.mxu1 %v4062_v28 }
0x1713   : > { %3584 = vmatpush3.bf16.msra.mxu0 %v4063_v29  ;;  %3606 = vmatpush3.bf16.msra.mxu1 %v4064_v31 }
0x1714   : > { %3585 = vmatprep.subr.bf16.mxu0 %v4065_v32  ;;  %3607 = vmatprep.subr.bf16.mxu1 %v4066_v33 }
0x1717   : > { %3586 = vmatpush3.bf16.msra.mxu0 %v4067_v34  ;;  %3608 = vmatpush3.bf16.msra.mxu1 %v4068_v35 }
0x1718   : > { %3587 = vmatprep.subr.bf16.mxu0 %v4069_v36  ;;  %3609 = vmatprep.subr.bf16.mxu1 %v4070_v37 }
0x171b   : > { %3588 = vmatpush3.bf16.msra.mxu0 %v4071_v38  ;;  %3610 = vmatpush3.bf16.msra.mxu1 %v4072_v39 }
0x171c   : > { %3589 = vmatprep.subr.bf16.mxu0 %v4073_v40  ;;  %3611 = vmatprep.subr.bf16.mxu1 %v4074_v42 }
0x171f   : > { %3590 = vmatpush3.bf16.msra.mxu0 %v4075_v44  ;;  %3612 = vmatpush3.bf16.msra.mxu1 %v4076_v45 }
0x17d5   : > { %v2672_v54 = vpop.f32.mrb[48].mxu0  ;;  %v2715_v55 = vpop.f32.mrb[60].mxu1 }
0x17d6   : > { %v2673_v56 = vadd.f32 %v2672_v54, %v2461_v50  ;;  %v2716_v57 = vadd.f32 %v2715_v55, %v2469_v51  ;;  %v2674_v58 = vpop.f32.mrb[49].mxu0  ;;  %v2717_v59 = vpop.f32.mrb[61].mxu1  ;;  %v3489_v54 = vld [vmem:[%s5527_s7 + $0x5] ss:$0 sm:$0xff] }
0x17d7   : > { %v2675_v60 = vadd.f32 %v2674_v58, %v2465_v52  ;;  %v2718_v61 = vadd.f32 %v2717_v59, %v2473_v53  ;;  %v2676_v62 = vpop.f32.mrb[50].mxu0  ;;  %v2719_v2 = vpop.f32.mrb[62].mxu1 }
0x17d8   : > { %v2677_v1 = vadd.f32 %v2676_v62, %v2461_v50  ;;  %v2720_v3 = vadd.f32 %v2719_v2, %v2469_v51  ;;  %v2678_v5 = vpop.f32.mrb[51].mxu0  ;;  %v2721_v6 = vpop.f32.mrb[63].mxu1  ;;  %v2724_v9 = vmax.f32 %v2673_v56, 0.0  ;;  %v2726_v10 = vmax.f32 %v2716_v57, 0.0 }
0x17d9   : > { %v2679_v7 = vadd.f32 %v2678_v5, %v2465_v52  ;;  %v2722_v8 = vadd.f32 %v2721_v6, %v2473_v53  ;;  %v2725_v14 = vmax.f32 %v2675_v60, 0.0  ;;  %v2727_v15 = vmax.f32 %v2718_v61, 0.0  ;;  %v3488_v52 = vld [vmem:[%s5527_s7 + $0x4] ss:$0 sm:$0xff] }
0x17da   : > { %v2728_v30 = vmax.f32 %v2677_v1, 0.0  ;;  %v2730_v11 = vmax.f32 %v2720_v3, 0.0 }
0x17db   : > { %v2729_v63 = vmax.f32 %v2679_v7, 0.0  ;;  %v2731_v16 = vmax.f32 %v2722_v8, 0.0 }
0x17dc   : > { %v2732_v17 = vpack.c.bf16 %v2728_v30, %v2724_v9  ;;  %v2734_v4 = vpack.c.bf16 %v2730_v11, %v2726_v10 }
0x17dd   : > { %v2733_v18 = vpack.c.bf16 %v2729_v63, %v2725_v14  ;;  %v2735_v19 = vpack.c.bf16 %v2731_v16, %v2727_v15 }
0x17df   : > { %3029 = vmatprep.mubr.bf16.mxu0 %v2733_v18  ;;  %3070 = vmatprep.mubr.bf16.mxu1 %v2735_v19 }
0x17e0   : > { %3030 = vmatmul.mubr.bf16.vlgmr.msra.gmra.mrb[52].mxu0 %v2732_v17  ;;  %3071 = vmatmul.mubr.bf16.vlgmr.msra.gmra.mrb[64].mxu1 %v2734_v4 }
0x18b3   : > { %v3591_v20 = vpop.f32.mrb[52].mxu0  ;;  %v3613_v21 = vpop.f32.mrb[64].mxu1 }
0x18b4   : > { %v3592_v22 = vpop.f32.mrb[53].mxu0  ;;  %v3614_v23 = vpop.f32.mrb[65].mxu1 }
0x18b5   : > { %v3593_v24 = vadd.f32 %v3592_v22, %v3591_v20  ;;  %v3615_v26 = vadd.f32 %v3614_v23, %v3613_v21  ;;  %v3594_v27 = vpop.f32.mrb[54].mxu0  ;;  %v3616_v28 = vpop.f32.mrb[66].mxu1 }
0x18b6   : > { %v3595_v29 = vpop.f32.mrb[55].mxu0  ;;  %v3617_v31 = vpop.f32.mrb[67].mxu1 }
0x18b7   : > { %v3032_v32 = vadd.f32 %v3593_v24, %v3455_v25  ;;  %v3596_v33 = vadd.f32 %v3595_v29, %v3594_v27  ;;  %v3618_v34 = vadd.f32 %v3617_v31, %v3616_v28 }
0x18b9   : > { %v3073_v35 = vadd.f32 %v3615_v26, %v3032_v32  ;;  %v3035_v36 = vadd.f32 %v3596_v33, %v3455_v25 }
0x18bb   : > { %v3076_v37 = vadd.f32 %v3618_v34, %v3035_v36  ;;  %v3079_v38 = vadd.f32 %v3073_v35, %v5355_v12 }
0x18bd   : > { %3083 = vadd.xlane.f32.xlu1 %v3079_v38  ;;  %v3080_v39 = vadd.f32 %v3076_v37, %v5357_v13 }
0x18c1   : > { %3085 = vadd.xlane.f32.xlu1 %v3080_v39 }
0x194a   : > { %v3084_v40 = vpop.xlane.xlu1 %3083 }
0x194b   : > { %v3087_v42 = vmul.f32 0.0078125, %v3084_v40 }
0x194d   : > { %v3089_v44 = vsub.f32 %v3079_v38, %v3087_v42 }
0x194e   : > { %v3086_v45 = vpop.xlane.xlu1 %3085 }
0x194f   : > { %v3088_v0 = vmul.f32 0.0078125, %v3086_v45  ;;  %v3091_v41 = vmul.f32 %v3089_v44, %v3089_v44 }
0x1951   : > { %v3090_v46 = vsub.f32 %v3080_v39, %v3088_v0  ;;  %3093 = vadd.xlane.f32.xlu0 %v3091_v41 }
0x1953   : > { %v3092_v47 = vmul.f32 %v3090_v46, %v3090_v46 }
0x1955   : > { %3095 = vadd.xlane.f32.xlu1 %v3092_v47 }
0x19de   : > { %v3094_v43 = vpop.xlane.xlu0 %3093 }
0x19df   : > { %v3097_v48 = vmul.f32 0.0078125, %v3094_v43 }
0x19e1   : > { %v3099_v49 = vadd.f32 1e-05, %v3097_v48 }
0x19e2   : > { %v3096_v12 = vpop.xlane.xlu1 %3095 }
0x19e3   : > { %4145 = vrsqrt.f32 %v3099_v49  ;;  %v3098_v50 = vmul.f32 0.0078125, %v3096_v12 }
0x19e5   : > { %v3100_v13 = vadd.f32 1e-05, %v3098_v50 }
0x19e7   : > { %4147 = vrsqrt.f32 %v3100_v13 }
0x19ed   : > { %v4146_v51 = vpop.eup %4145 }
0x19ee   : > { %v3103_v53 = vmul.f32 %v4146_v51, %v3089_v44 }
0x19f0   : > { %v3109_v55 = vmul.f32 %v3488_v52, %v3103_v53 }
0x19f1   : > { %v4148_v56 = vpop.eup %4147 }
0x19f2   : > { %v3115_v57 = vadd.f32 %v3489_v54, %v3109_v55  ;;  %v3104_v58 = vmul.f32 %v4148_v56, %v3090_v46 }
0x19f4   : > { %v3110_v59 = vmul.f32 %v3488_v52, %v3104_v58  ;;  %3117 = vst [vmem:[%s635_s29] sm:$0xff] %v3115_v57 }
0x19f6   : > { %v3116_v60 = vadd.f32 %v3489_v54, %v3110_v59 }
0x19f8   : > { %3118 = vst [vmem:[%s635_s29 + $0x8] sm:$0xff] %v3116_v60 }
0x19f9   : > { %4452 = shalt.err (!%p4449_p2)
}
0x19fa   : > { %s4453_s26 = scalar_lea.hbm %s5380_s23, 256  ;;  %s4457_s19 = scalar_lea.hbm %s5530_s5, 512 }
0x19fb   : > { %p4454_p1 = scmp.ne.s32.totalorder %s5380_s23, %s4453_s26  ;;  %p4458_p10 = scmp.lt.u32.totalorder %s5380_s23, %s5530_s5 }
0x19fc   : > { %p4459_p12 = scmp.lt.u32.totalorder %s4457_s19, %s4453_s26  ;;  %p4461_p7 = scmp.lt.u32.totalorder %s4453_s26, %s5380_s23 }
0x19fd   : > { %p4455_p8 = pnand %p4454_p1, %p5531_p5 }
0x19fe   : > { %p4460_p13 = por %p4459_p12, %p4458_p10 }
0x19ff   : > { %p4456_p4 = pneg %p4455_p8 }
0x1a00   : > { %p4462_p11 = por %p4461_p7, %p4460_p13 }
0x1a02   : > { %p4463_p6 = pnand %p4462_p11, %p4456_p4 }
0x1a04   : > { %4466 = shalt.err (!%p4463_p6)
}
0x1a05   : > { %s4558_s22 = smov 128   ;;  %s4559_s15 = smov 8  }
0x1a06   : > { %3855 = dma.vmem_to_hbm [thread:$0]  (%p5531_p5), %s5382_s6, 256, %s5380_s23, %s3120_s20, %s4558_s22, %s4558_s22, %s4559_s15  }
0x1a07 PF: > { %s5532_s17 = sld [smem:[#allocation28_spill]]  ;;  %s5533_s30 = sld [smem:[#allocation37_spill]] }
0x1a08   : > { %p5535_p9 = scmp.ge.s32.totalorder %s4529_s24, 2 }
0x1a0d   : > { %s3148_s16 = sand.u32 1, %s5532_s17   ;;  %p5534_p3 = scmp.ne.s32.totalorder %s5533_s30, 0 }
0x1a0e   : > { %s3149_s29 = scalar_lea.sflag [#allocation4], %s3148_s16 }
0x1a0f   : > { %p3890_p0 = pnand %p5535_p9, %p5534_p3 }
0x1a11   : > { %4512 = dma.done.wait (!%p3890_p0), %s3149_s29, 256  }
0x1a12   : > { %4514 = vsyncadd (!%p3890_p0), %s3149_s29, 4294967040  ;;  %s5536_s24 = sld [smem:[#allocation33_spill]]  ;;  %s5537_s21 = sld [smem:[#allocation29_spill]] }
0x1a13   : > { %s5538_s22 = sld [smem:[#allocation30_spill]]  ;;  %s5539_s23 = sld [smem:[#allocation34_spill]] }
0x1a18   : > { %p34_p2 = scmp.ge.s32.totalorder %s5536_s24, 4  }
0x1a1a   :  { %36 = sbr.rel (!%p34_p2) target bundleno = 21 (0x15), region = 174 }
0x1a21   :  { %3154 = vsyncpa [#allocation3], 1 }
0x1a22   :  { %3156 = vsyncpa [#allocation3 + $0x1], 1 }
0x1a23   :  { %3157 = vsyncpa [#allocation6], 1 }
0x1a24   :  { %3159 = vsyncpa [#allocation6 + $0x1], 1 }
0x1a25   :  { %3160 = vsyncpa [#allocation9], 1 }
0x1a26   :  { %3162 = vsyncpa [#allocation9 + $0x1], 1 }
0x1a27   :  { %3163 = vsyncpa [#allocation12], 1 }
0x1a28   :  { %3164 = vsyncpa [#allocation15], 1 }
0x1a29   :  { %3165 = vsyncpa [#allocation18], 1 }
0x1a2a   :  { %3166 = vsyncpa [#allocation4], 1 }
0x1a2b   :  { %3168 = vsyncpa [#allocation4 + $0x1], 1 }

</bundles_post_ra>
